<compile_context>
chip_gen: v5e
topology: v5e:2x2
jax: 0.10.0
libtpu: 0.0.40
codegen_flags: <defaults>
</compile_context>

<pallas_src>
import functools

import jax
import jax.numpy as jnp
from jax import lax
from jax.experimental import pallas as pl
from jax.experimental.pallas import tpu as pltpu


_DEF_TILE = 512  # 512x512: 1 MiB f32 / 256 KiB int8; multiple of (8,128)/(32,128).


def _pick_tile(n, pref=_DEF_TILE):
    if n <= pref:
        return n
    for ts in (512, 384, 256, 128):
        if n % ts == 0:
            return ts
    # TODO(synk): pad n up to a multiple of 128 for very large, non-aligned n.
    return n


# ---------------------------------------------------------------------------
# Kernel 1 (fused): sim = student @ teacher.T + 10*eye(n), then per-row top-k.
# Only the (n, top_k) index matrix is written to HBM.
# ---------------------------------------------------------------------------
def _sim_topk_kernel(s_ref, t_ref, iknn_ref, vals_sc, idx_sc, *, top_k):
    i = pl.program_id(0)
    j = pl.program_id(1)

    @pl.when(j == 0)
    def _():
        vals_sc[...] = jnp.full(vals_sc.shape, -jnp.inf, jnp.float32)
        idx_sc[...] = jnp.full(idx_sc.shape, -1, jnp.int32)

    # Contract the feature dims directly: no in-kernel transpose, the MXU
    # consumes teacher natively.
    sim = lax.dot_general(
        s_ref[...], t_ref[...],
        dimension_numbers=(((1,), (1,)), ((), ())),
        preferred_element_type=jnp.float32,
    )
    tm, tn = sim.shape

    col = lax.broadcasted_iota(jnp.int32, (tm, tn), 1) + j * tn   # global cols
    row = lax.broadcasted_iota(jnp.int32, (tm, tn), 0) + i * tm   # global rows
    # similarity += 10 * eye(n)  (predicate only ever true on diagonal tiles)
    sim = jnp.where(row == col, sim + jnp.float32(10.0), sim)

    big = jnp.int32(2**31 - 1)
    neg_inf = jnp.float32(-jnp.inf)

    # Phase 1: this tile's local top-k (descending; ties -> lowest column).
    tile_v, tile_i = [], []
    v = sim
    for t in range(top_k):
        m = jnp.max(v, axis=1, keepdims=True)                         # (tm, 1)
        sel = jnp.min(jnp.where(v == m, col, big), axis=1, keepdims=True)
        tile_v.append(m)
        tile_i.append(sel)
        if t < top_k - 1:
            v = jnp.where(col == sel, neg_inf, v)
    tile_v = jnp.concatenate(tile_v, axis=1)                          # (tm, k)
    tile_i = jnp.concatenate(tile_i, axis=1)                          # (tm, k)

    # Phase 2: merge with the running top-k (column sets are disjoint, so
    # masking by index removes exactly one candidate per step).
    cand_v = jnp.concatenate([vals_sc[...], tile_v], axis=1)          # (tm, 2k)
    cand_i = jnp.concatenate([idx_sc[...], tile_i], axis=1)
    for t in range(top_k):
        m = jnp.max(cand_v, axis=1, keepdims=True)
        sel = jnp.min(jnp.where(cand_v == m, cand_i, big), axis=1, keepdims=True)
        vals_sc[:, t:t + 1] = m
        idx_sc[:, t:t + 1] = sel
        if t < top_k - 1:
            cand_v = jnp.where(cand_i == sel, neg_inf, cand_v)

    @pl.when(j == pl.num_programs(1) - 1)
    def _():
        iknn_ref[...] = idx_sc[...]


def knn_pallas(student, teacher, top_k):
    """Fused `student @ teacher.T + 10*eye(n)` + row-wise top-k indices."""
    n, d = student.shape
    ts = _pick_tile(n)
    grid = (n // ts, n // ts)
    kernel = functools.partial(_sim_topk_kernel, top_k=top_k)
    return pl.pallas_call(
        kernel,
        grid=grid,
        in_specs=[
            pl.BlockSpec((ts, d), lambda i, j: (i, 0)),   # student row tile
            pl.BlockSpec((ts, d), lambda i, j: (j, 0)),   # teacher rows (= sim cols)
        ],
        out_specs=pl.BlockSpec((ts, top_k), lambda i, j: (i, 0)),
        out_shape=jax.ShapeDtypeStruct((n, top_k), jnp.int32),
        scratch_shapes=[
            pltpu.VMEM((ts, top_k), jnp.float32),   # running top-k values
            pltpu.VMEM((ts, top_k), jnp.int32),     # running top-k indices
        ],
        compiler_params=pltpu.CompilerParams(
            dimension_semantics=("parallel", "arbitrary")),
    )(student, teacher)


# ---------------------------------------------------------------------------
# Kernel 2 (fused, int8 in / int8 out):
#   pos_mask = (knn_mask & (adj != 0)) | globality_mask
# knn_mask / globality are rebuilt in-kernel from I_knn / all_close, so no
# dense n x n scatters and the n^2 streams are 1 byte/element.
# ---------------------------------------------------------------------------
def _pos_kernel(knn_ref, close_ref, adj_ref, o_ref):
    tm, tn = o_ref.shape
    shift = pl.program_id(1) * tn
    col = lax.broadcasted_iota(jnp.int32, (tm, tn), 1)     # tile-local columns
    knn_local = knn_ref[...] - shift                        # (tm, k), small array
    # neighbours whose cluster label matches keep their index; others get a
    # sentinel that can never equal a tile-local column index.
    knn_close_local = jnp.where(close_ref[...] != 0, knn_local, jnp.int32(-(2**30)))

    k = knn_local.shape[1]
    hit = knn_local[:, 0:1] == col
    glob = knn_close_local[:, 0:1] == col
    for jj in range(1, k):                                  # k small & static
        hit = hit | (knn_local[:, jj:jj + 1] == col)
        glob = glob | (knn_close_local[:, jj:jj + 1] == col)

    adj_nz = adj_ref[...] != 0
    # TODO(synk): int8 nonzero-mask output is valid because downstream only
    # consumes jnp.nonzero(pos); assumes adj >= 0 (no exact cancellation with
    # the +1 globality values of the original formulation).
    o_ref[...] = jnp.where((hit & adj_nz) | glob, jnp.int8(1), jnp.int8(0))


def pos_pallas(I_knn, all_close, adj):
    n = adj.shape[0]
    k = I_knn.shape[1]
    ts = _pick_tile(n)
    grid = (n // ts, n // ts)
    return pl.pallas_call(
        _pos_kernel,
        grid=grid,
        in_specs=[
            pl.BlockSpec((ts, k), lambda i, j: (i, 0)),    # I_knn row tile
            pl.BlockSpec((ts, k), lambda i, j: (i, 0)),    # all_close row tile
            pl.BlockSpec((ts, ts), lambda i, j: (i, j)),   # adj tile (int8)
        ],
        out_specs=pl.BlockSpec((ts, ts), lambda i, j: (i, j)),
        out_shape=jax.ShapeDtypeStruct((n, n), jnp.int8),
        compiler_params=pltpu.CompilerParams(
            dimension_semantics=("parallel", "parallel")),
    )(I_knn.astype(jnp.int32),
      all_close.astype(jnp.int8),
      (adj != 0).astype(jnp.int8))


# ---------------------------------------------------------------------------
# Batched Lloyd's k-means in plain XLA (replaces faiss.Kmeans): all num_kmeans
# seeds are trained together, so assignment is one stacked matmul per iter.
# ---------------------------------------------------------------------------
def kmeans_labels_batched(teacher, ncentroids, niter, seeds):
    # TODO(synk): faiss.Kmeans init / training details are not reproducible
    # bit-exactly; this uses random data-point init + Lloyd iterations.
    n, d = teacher.shape
    init_idx = jnp.stack([
        jax.random.choice(jax.random.PRNGKey(s), n, shape=(ncentroids,),
                          replace=False)
        for s in seeds])                                    # (m, C)
    cent = teacher[init_idx]                                # (m, C, d)

    def assign(c):
        # ||t||^2 is constant over centroids and does not change the argmin.
        d2 = jnp.sum(c * c, axis=-1)[:, None, :] - 2.0 * jnp.einsum(
            'nd,mcd->mnc', teacher, c)
        return jnp.argmin(d2, axis=-1)                      # (m, n)

    for _ in range(niter):
        labels = assign(cent)
        onehot = jax.nn.one_hot(labels, ncentroids, dtype=teacher.dtype)  # (m,n,C)
        counts = onehot.sum(axis=1)                                       # (m,C)
        sums = jnp.einsum('mnc,nd->mcd', onehot, teacher)                 # (m,C,d)
        new_c = sums / jnp.maximum(counts, 1.0)[..., None]
        cent = jnp.where(counts[..., None] > 0, new_c, cent)
    return assign(cent)                                     # (m, n)


# ---------------------------------------------------------------------------
# Neighbor.forward equivalent
# ---------------------------------------------------------------------------
def neighbor_forward(adj, student, teacher, top_k, epoch=0,
                     num_centroids=4, num_kmeans=3, clus_num_iters=5):
    del epoch  # unused, kept for signature parity with the torch module
    n_data, d = student.shape

    # Fused similarity(+10*eye) + top-k: only the (n, k) index matrix is
    # materialised in HBM.
    I_knn = knn_pallas(student, teacher, top_k)             # (n, k) int32
    k = int(I_knn.shape[1])

    # Cluster labels for all num_kmeans seeds at once.
    labels = kmeans_labels_batched(
        teacher, num_centroids, clus_num_iters,
        [seed + 1234 for seed in range(num_kmeans)])        # (m, n)

    # all_close[i, j] = OR_s ( labels[s, i] == labels[s, I_knn[i, j]] )
    top_labels = labels[:, I_knn]                           # (m, n, k)
    all_close = jnp.any(labels[:, :, None] == top_labels, axis=0)   # (n, k) bool

    # pos_ = locality + globality = knn_mask*adj + globality, emitted as an
    # int8 nonzero-mask (downstream only needs the nonzero index set).
    pos = pos_pallas(I_knn, all_close, adj)                 # (n, n) int8

    # coalesce()._indices(): nonzero positions in row-major order (2, nnz).
    # Data-dependent shape -> evaluated eagerly, like the original sparse path.
    rows, cols = jnp.nonzero(pos)
    indices = jnp.stack([rows, cols], axis=0)
    return indices, k


# ---------------------------------------------------------------------------
if __name__ == "__main__":
    n_data, d, top_k = 32, 16, 4

    key = jax.random.PRNGKey(0)
    k1, k2, k3 = jax.random.split(key, 3)
    student = jax.random.normal(k1, (n_data, d), jnp.float32)
    teacher = jax.random.normal(k2, (n_data, d), jnp.float32)
    # dense binary adjacency (stand-in for the sparse `adj` in the original)
    adj = (jax.random.uniform(k3, (n_data, n_data)) < 0.3).astype(jnp.float32)
    adj = jnp.maximum(adj, adj.T)  # symmetric

    indices, k = neighbor_forward(adj, student, teacher, top_k,
                                  num_centroids=4, num_kmeans=3,
                                  clus_num_iters=5)
    jax.block_until_ready(indices)
    assert indices.shape[0] == 2 and k == top_k
    assert bool(jnp.all((indices >= 0) & (indices < n_data)))

    # Sanity checks on the fused top-k kernel: indices valid and distinct.
    I_knn = knn_pallas(student, teacher, top_k)
    jax.block_until_ready(I_knn)
    assert I_knn.shape == (n_data, top_k)
    assert bool(jnp.all((I_knn >= 0) & (I_knn < n_data)))
    srt = jnp.sort(I_knn, axis=1)
    assert bool(jnp.all(srt[:, 1:] != srt[:, :-1]))

    # Cross-check the fused pos kernel against a dense JAX reference built
    # from the same I_knn / all_close (pure integer/boolean logic, exact).
    labels = kmeans_labels_batched(teacher, 4, 5, [1234, 1235, 1236])
    all_close = jnp.any(labels[:, :, None] == labels[:, I_knn], axis=0)
    pos = pos_pallas(I_knn, all_close, adj)
    rows_arange = jnp.arange(n_data)[:, None]
    knn_mask = jnp.zeros((n_data, n_data), bool).at[rows_arange, I_knn].set(True)
    glob = jnp.zeros((n_data, n_data), bool).at[rows_arange, I_knn].set(all_close)
    pos_ref = (knn_mask & (adj != 0)) | glob
    assert bool(jnp.array_equal(pos.astype(bool), pos_ref))

    print("KERNEL_OK")
</pallas_src>

<mosaic_0001>
module attributes {stable_mosaic.version = 11 : i64} {
  func.func @_sim_topk_kernel(%arg0: i32, %arg1: i32, %arg2: memref<32x16xf32, #tpu.memory_space<vmem>>, %arg3: memref<32x16xf32, #tpu.memory_space<vmem>>, %arg4: memref<32x4xi32, #tpu.memory_space<vmem>>, %arg5: memref<32x4xf32, #tpu.memory_space<vmem>>, %arg6: memref<32x4xi32, #tpu.memory_space<vmem>>) attributes {dimension_semantics = [#tpu.dimension_semantics<parallel>, #tpu.dimension_semantics<arbitrary>], iteration_bounds = array<i64: 1, 1>, scalar_prefetch = 0 : i64, scratch_operands = 2 : i64, tpu.core_type = #tpu.core_type<tc>, window_params = [{transform_indices = @transform_0, window_bounds = array<i64: 32, 16>}, {transform_indices = @transform_1, window_bounds = array<i64: 32, 16>}, {transform_indices = @transform_2, window_bounds = array<i64: 32, 4>}]} {
    %c0_i32 = arith.constant 0 : i32
    %0 = arith.cmpi eq, %arg1, %c0_i32 : i32
    %1 = arith.extui %0 : i1 to i32
    %c0_i32_0 = arith.constant 0 : i32
    %2 = arith.cmpi ne, %1, %c0_i32_0 : i32
    scf.if %2 {
      %cst_54 = arith.constant 0xFF800000 : f32
      %123 = vector.broadcast %cst_54 : f32 to vector<32x4xf32>
      %c0_55 = arith.constant 0 : index
      %c0_56 = arith.constant 0 : index
      %124 = vector.load %arg5[%c0_55, %c0_56] : memref<32x4xf32, #tpu.memory_space<vmem>>, vector<32x4xf32>
      tpu.vector_store %arg5[%c0_55, %c0_56], %123 {strides = array<i32>} : memref<32x4xf32, #tpu.memory_space<vmem>>, vector<32x4xf32>,
      %c-1_i32 = arith.constant -1 : i32
      %125 = vector.broadcast %c-1_i32 : i32 to vector<32x4xi32>
      %c0_57 = arith.constant 0 : index
      %c0_58 = arith.constant 0 : index
      %126 = vector.load %arg6[%c0_57, %c0_58] : memref<32x4xi32, #tpu.memory_space<vmem>>, vector<32x4xi32>
      tpu.vector_store %arg6[%c0_57, %c0_58], %125 {strides = array<i32>} : memref<32x4xi32, #tpu.memory_space<vmem>>, vector<32x4xi32>,
    } else {
    }
    %c0 = arith.constant 0 : index
    %c0_1 = arith.constant 0 : index
    %3 = vector.load %arg2[%c0, %c0_1] : memref<32x16xf32, #tpu.memory_space<vmem>>, vector<32x16xf32>
    %c0_2 = arith.constant 0 : index
    %c0_3 = arith.constant 0 : index
    %4 = vector.load %arg3[%c0_2, %c0_3] : memref<32x16xf32, #tpu.memory_space<vmem>>, vector<32x16xf32>
    %cst = arith.constant dense<0.000000e+00> : vector<32x32xf32>
    %5 = tpu.matmul %3, %4, %cst {dimension_numbers = #tpu.dot_dimension_numbers<[1], [1], [0], [0], [0, 0, 1, 0], [], []>} : vector<32x16xf32>, vector<32x16xf32>, vector<32x32xf32> -> vector<32x32xf32>
    %6 = tpu.iota {dimensions = array<i32: 1>} : vector<32x32xi32>
    %c32_i32 = arith.constant 32 : i32
    %7 = arith.muli %arg1, %c32_i32 : i32
    %8 = vector.broadcast %7 : i32 to vector<32x32xi32>
    %9 = arith.addi %6, %8 : vector<32x32xi32>
    %10 = tpu.iota {dimensions = array<i32: 0>} : vector<32x32xi32>
    %c32_i32_4 = arith.constant 32 : i32
    %11 = arith.muli %arg0, %c32_i32_4 : i32
    %12 = vector.broadcast %11 : i32 to vector<32x32xi32>
    %13 = arith.addi %10, %12 : vector<32x32xi32>
    %14 = arith.cmpi eq, %13, %9 : vector<32x32xi32>
    %cst_5 = arith.constant 1.000000e+01 : f32
    %15 = vector.broadcast %cst_5 : f32 to vector<32x32xf32>
    %16 = arith.addf %5, %15 : vector<32x32xf32>
    %17 = arith.select %14, %16, %5 : vector<32x32xi1>, vector<32x32xf32>
    %cst_6 = arith.constant dense<0xFF800000> : vector<32xf32>
    %18 = vector.multi_reduction <maximumf>, %17, %cst_6 [1] : vector<32x32xf32> to vector<32xf32>
    %19 = vector.shape_cast %18 : vector<32xf32> to vector<32x1xf32>
    %20 = vector.broadcast %19 : vector<32x1xf32> to vector<32x32xf32>
    %21 = arith.cmpf oeq, %17, %20 : vector<32x32xf32>
    %c2147483647_i32 = arith.constant 2147483647 : i32
    %22 = vector.broadcast %c2147483647_i32 : i32 to vector<32x32xi32>
    %23 = arith.select %21, %9, %22 : vector<32x32xi1>, vector<32x32xi32>
    %cst_7 = arith.constant dense<2147483647> : vector<32xi32>
    %24 = vector.multi_reduction <minsi>, %23, %cst_7 [1] : vector<32x32xi32> to vector<32xi32>
    %25 = vector.shape_cast %24 : vector<32xi32> to vector<32x1xi32>
    %26 = vector.broadcast %25 : vector<32x1xi32> to vector<32x32xi32>
    %27 = arith.cmpi eq, %9, %26 : vector<32x32xi32>
    %cst_8 = arith.constant 0xFF800000 : f32
    %28 = vector.broadcast %cst_8 : f32 to vector<32x32xf32>
    %29 = arith.select %27, %28, %17 : vector<32x32xi1>, vector<32x32xf32>
    %cst_9 = arith.constant dense<0xFF800000> : vector<32xf32>
    %30 = vector.multi_reduction <maximumf>, %29, %cst_9 [1] : vector<32x32xf32> to vector<32xf32>
    %31 = vector.shape_cast %30 : vector<32xf32> to vector<32x1xf32>
    %32 = vector.broadcast %31 : vector<32x1xf32> to vector<32x32xf32>
    %33 = arith.cmpf oeq, %29, %32 : vector<32x32xf32>
    %c2147483647_i32_10 = arith.constant 2147483647 : i32
    %34 = vector.broadcast %c2147483647_i32_10 : i32 to vector<32x32xi32>
    %35 = arith.select %33, %9, %34 : vector<32x32xi1>, vector<32x32xi32>
    %cst_11 = arith.constant dense<2147483647> : vector<32xi32>
    %36 = vector.multi_reduction <minsi>, %35, %cst_11 [1] : vector<32x32xi32> to vector<32xi32>
    %37 = vector.shape_cast %36 : vector<32xi32> to vector<32x1xi32>
    %38 = vector.broadcast %37 : vector<32x1xi32> to vector<32x32xi32>
    %39 = arith.cmpi eq, %9, %38 : vector<32x32xi32>
    %cst_12 = arith.constant 0xFF800000 : f32
    %40 = vector.broadcast %cst_12 : f32 to vector<32x32xf32>
    %41 = arith.select %39, %40, %29 : vector<32x32xi1>, vector<32x32xf32>
    %cst_13 = arith.constant dense<0xFF800000> : vector<32xf32>
    %42 = vector.multi_reduction <maximumf>, %41, %cst_13 [1] : vector<32x32xf32> to vector<32xf32>
    %43 = vector.shape_cast %42 : vector<32xf32> to vector<32x1xf32>
    %44 = vector.broadcast %43 : vector<32x1xf32> to vector<32x32xf32>
    %45 = arith.cmpf oeq, %41, %44 : vector<32x32xf32>
    %c2147483647_i32_14 = arith.constant 2147483647 : i32
    %46 = vector.broadcast %c2147483647_i32_14 : i32 to vector<32x32xi32>
    %47 = arith.select %45, %9, %46 : vector<32x32xi1>, vector<32x32xi32>
    %cst_15 = arith.constant dense<2147483647> : vector<32xi32>
    %48 = vector.multi_reduction <minsi>, %47, %cst_15 [1] : vector<32x32xi32> to vector<32xi32>
    %49 = vector.shape_cast %48 : vector<32xi32> to vector<32x1xi32>
    %50 = vector.broadcast %49 : vector<32x1xi32> to vector<32x32xi32>
    %51 = arith.cmpi eq, %9, %50 : vector<32x32xi32>
    %cst_16 = arith.constant 0xFF800000 : f32
    %52 = vector.broadcast %cst_16 : f32 to vector<32x32xf32>
    %53 = arith.select %51, %52, %41 : vector<32x32xi1>, vector<32x32xf32>
    %cst_17 = arith.constant dense<0xFF800000> : vector<32xf32>
    %54 = vector.multi_reduction <maximumf>, %53, %cst_17 [1] : vector<32x32xf32> to vector<32xf32>
    %55 = vector.shape_cast %54 : vector<32xf32> to vector<32x1xf32>
    %56 = vector.broadcast %55 : vector<32x1xf32> to vector<32x32xf32>
    %57 = arith.cmpf oeq, %53, %56 : vector<32x32xf32>
    %c2147483647_i32_18 = arith.constant 2147483647 : i32
    %58 = vector.broadcast %c2147483647_i32_18 : i32 to vector<32x32xi32>
    %59 = arith.select %57, %9, %58 : vector<32x32xi1>, vector<32x32xi32>
    %cst_19 = arith.constant dense<2147483647> : vector<32xi32>
    %60 = vector.multi_reduction <minsi>, %59, %cst_19 [1] : vector<32x32xi32> to vector<32xi32>
    %61 = vector.shape_cast %60 : vector<32xi32> to vector<32x1xi32>
    %62 = tpu.concatenate %19, %31, %43, %55 in 1 : vector<32x1xf32>, vector<32x1xf32>, vector<32x1xf32>, vector<32x1xf32> -> vector<32x4xf32>
    %63 = tpu.concatenate %25, %37, %49, %61 in 1 : vector<32x1xi32>, vector<32x1xi32>, vector<32x1xi32>, vector<32x1xi32> -> vector<32x4xi32>
    %c0_20 = arith.constant 0 : index
    %c0_21 = arith.constant 0 : index
    %64 = vector.load %arg5[%c0_20, %c0_21] : memref<32x4xf32, #tpu.memory_space<vmem>>, vector<32x4xf32>
    %65 = tpu.concatenate %64, %62 in 1 : vector<32x4xf32>, vector<32x4xf32> -> vector<32x8xf32>
    %c0_22 = arith.constant 0 : index
    %c0_23 = arith.constant 0 : index
    %66 = vector.load %arg6[%c0_22, %c0_23] : memref<32x4xi32, #tpu.memory_space<vmem>>, vector<32x4xi32>
    %67 = tpu.concatenate %66, %63 in 1 : vector<32x4xi32>, vector<32x4xi32> -> vector<32x8xi32>
    %cst_24 = arith.constant dense<0xFF800000> : vector<32xf32>
    %68 = vector.multi_reduction <maximumf>, %65, %cst_24 [1] : vector<32x8xf32> to vector<32xf32>
    %69 = vector.shape_cast %68 : vector<32xf32> to vector<32x1xf32>
    %70 = vector.broadcast %69 : vector<32x1xf32> to vector<32x8xf32>
    %71 = arith.cmpf oeq, %65, %70 : vector<32x8xf32>
    %c2147483647_i32_25 = arith.constant 2147483647 : i32
    %72 = vector.broadcast %c2147483647_i32_25 : i32 to vector<32x8xi32>
    %73 = arith.select %71, %67, %72 : vector<32x8xi1>, vector<32x8xi32>
    %cst_26 = arith.constant dense<2147483647> : vector<32xi32>
    %74 = vector.multi_reduction <minsi>, %73, %cst_26 [1] : vector<32x8xi32> to vector<32xi32>
    %75 = vector.shape_cast %74 : vector<32xi32> to vector<32x1xi32>
    %c0_27 = arith.constant 0 : index
    %c0_28 = arith.constant 0 : index
    %76 = vector.load %arg5[%c0_27, %c0_28] : memref<32x4xf32, #tpu.memory_space<vmem>>, vector<32x1xf32>
    tpu.vector_store %arg5[%c0_27, %c0_28], %69 {strides = array<i32>} : memref<32x4xf32, #tpu.memory_space<vmem>>, vector<32x1xf32>,
    %c0_29 = arith.constant 0 : index
    %c0_30 = arith.constant 0 : index
    %77 = vector.load %arg6[%c0_29, %c0_30] : memref<32x4xi32, #tpu.memory_space<vmem>>, vector<32x1xi32>
    tpu.vector_store %arg6[%c0_29, %c0_30], %75 {strides = array<i32>} : memref<32x4xi32, #tpu.memory_space<vmem>>, vector<32x1xi32>,
    %78 = vector.broadcast %75 : vector<32x1xi32> to vector<32x8xi32>
    %79 = arith.cmpi eq, %67, %78 : vector<32x8xi32>
    %cst_31 = arith.constant 0xFF800000 : f32
    %80 = vector.broadcast %cst_31 : f32 to vector<32x8xf32>
    %81 = arith.select %79, %80, %65 : vector<32x8xi1>, vector<32x8xf32>
    %cst_32 = arith.constant dense<0xFF800000> : vector<32xf32>
    %82 = vector.multi_reduction <maximumf>, %81, %cst_32 [1] : vector<32x8xf32> to vector<32xf32>
    %83 = vector.shape_cast %82 : vector<32xf32> to vector<32x1xf32>
    %84 = vector.broadcast %83 : vector<32x1xf32> to vector<32x8xf32>
    %85 = arith.cmpf oeq, %81, %84 : vector<32x8xf32>
    %c2147483647_i32_33 = arith.constant 2147483647 : i32
    %86 = vector.broadcast %c2147483647_i32_33 : i32 to vector<32x8xi32>
    %87 = arith.select %85, %67, %86 : vector<32x8xi1>, vector<32x8xi32>
    %cst_34 = arith.constant dense<2147483647> : vector<32xi32>
    %88 = vector.multi_reduction <minsi>, %87, %cst_34 [1] : vector<32x8xi32> to vector<32xi32>
    %89 = vector.shape_cast %88 : vector<32xi32> to vector<32x1xi32>
    %c0_35 = arith.constant 0 : index
    %c1 = arith.constant 1 : index
    %90 = vector.load %arg5[%c0_35, %c1] : memref<32x4xf32, #tpu.memory_space<vmem>>, vector<32x1xf32>
    tpu.vector_store %arg5[%c0_35, %c1], %83 {strides = array<i32>} : memref<32x4xf32, #tpu.memory_space<vmem>>, vector<32x1xf32>,
    %c0_36 = arith.constant 0 : index
    %c1_37 = arith.constant 1 : index
    %91 = vector.load %arg6[%c0_36, %c1_37] : memref<32x4xi32, #tpu.memory_space<vmem>>, vector<32x1xi32>
    tpu.vector_store %arg6[%c0_36, %c1_37], %89 {strides = array<i32>} : memref<32x4xi32, #tpu.memory_space<vmem>>, vector<32x1xi32>,
    %92 = vector.broadcast %89 : vector<32x1xi32> to vector<32x8xi32>
    %93 = arith.cmpi eq, %67, %92 : vector<32x8xi32>
    %cst_38 = arith.constant 0xFF800000 : f32
    %94 = vector.broadcast %cst_38 : f32 to vector<32x8xf32>
    %95 = arith.select %93, %94, %81 : vector<32x8xi1>, vector<32x8xf32>
    %cst_39 = arith.constant dense<0xFF800000> : vector<32xf32>
    %96 = vector.multi_reduction <maximumf>, %95, %cst_39 [1] : vector<32x8xf32> to vector<32xf32>
    %97 = vector.shape_cast %96 : vector<32xf32> to vector<32x1xf32>
    %98 = vector.broadcast %97 : vector<32x1xf32> to vector<32x8xf32>
    %99 = arith.cmpf oeq, %95, %98 : vector<32x8xf32>
    %c2147483647_i32_40 = arith.constant 2147483647 : i32
    %100 = vector.broadcast %c2147483647_i32_40 : i32 to vector<32x8xi32>
    %101 = arith.select %99, %67, %100 : vector<32x8xi1>, vector<32x8xi32>
    %cst_41 = arith.constant dense<2147483647> : vector<32xi32>
    %102 = vector.multi_reduction <minsi>, %101, %cst_41 [1] : vector<32x8xi32> to vector<32xi32>
    %103 = vector.shape_cast %102 : vector<32xi32> to vector<32x1xi32>
    %c0_42 = arith.constant 0 : index
    %c2 = arith.constant 2 : index
    %104 = vector.load %arg5[%c0_42, %c2] : memref<32x4xf32, #tpu.memory_space<vmem>>, vector<32x1xf32>
    tpu.vector_store %arg5[%c0_42, %c2], %97 {strides = array<i32>} : memref<32x4xf32, #tpu.memory_space<vmem>>, vector<32x1xf32>,
    %c0_43 = arith.constant 0 : index
    %c2_44 = arith.constant 2 : index
    %105 = vector.load %arg6[%c0_43, %c2_44] : memref<32x4xi32, #tpu.memory_space<vmem>>, vector<32x1xi32>
    tpu.vector_store %arg6[%c0_43, %c2_44], %103 {strides = array<i32>} : memref<32x4xi32, #tpu.memory_space<vmem>>, vector<32x1xi32>,
    %106 = vector.broadcast %103 : vector<32x1xi32> to vector<32x8xi32>
    %107 = arith.cmpi eq, %67, %106 : vector<32x8xi32>
    %cst_45 = arith.constant 0xFF800000 : f32
    %108 = vector.broadcast %cst_45 : f32 to vector<32x8xf32>
    %109 = arith.select %107, %108, %95 : vector<32x8xi1>, vector<32x8xf32>
    %cst_46 = arith.constant dense<0xFF800000> : vector<32xf32>
    %110 = vector.multi_reduction <maximumf>, %109, %cst_46 [1] : vector<32x8xf32> to vector<32xf32>
    %111 = vector.shape_cast %110 : vector<32xf32> to vector<32x1xf32>
    %112 = vector.broadcast %111 : vector<32x1xf32> to vector<32x8xf32>
    %113 = arith.cmpf oeq, %109, %112 : vector<32x8xf32>
    %c2147483647_i32_47 = arith.constant 2147483647 : i32
    %114 = vector.broadcast %c2147483647_i32_47 : i32 to vector<32x8xi32>
    %115 = arith.select %113, %67, %114 : vector<32x8xi1>, vector<32x8xi32>
    %cst_48 = arith.constant dense<2147483647> : vector<32xi32>
    %116 = vector.multi_reduction <minsi>, %115, %cst_48 [1] : vector<32x8xi32> to vector<32xi32>
    %117 = vector.shape_cast %116 : vector<32xi32> to vector<32x1xi32>
    %c0_49 = arith.constant 0 : index
    %c3 = arith.constant 3 : index
    %118 = vector.load %arg5[%c0_49, %c3] : memref<32x4xf32, #tpu.memory_space<vmem>>, vector<32x1xf32>
    tpu.vector_store %arg5[%c0_49, %c3], %111 {strides = array<i32>} : memref<32x4xf32, #tpu.memory_space<vmem>>, vector<32x1xf32>,
    %c0_50 = arith.constant 0 : index
    %c3_51 = arith.constant 3 : index
    %119 = vector.load %arg6[%c0_50, %c3_51] : memref<32x4xi32, #tpu.memory_space<vmem>>, vector<32x1xi32>
    tpu.vector_store %arg6[%c0_50, %c3_51], %117 {strides = array<i32>} : memref<32x4xi32, #tpu.memory_space<vmem>>, vector<32x1xi32>,
    %c0_i32_52 = arith.constant 0 : i32
    %120 = arith.cmpi eq, %arg1, %c0_i32_52 : i32
    %121 = arith.extui %120 : i1 to i32
    %c0_i32_53 = arith.constant 0 : i32
    %122 = arith.cmpi ne, %121, %c0_i32_53 : i32
    scf.if %122 {
      %c0_54 = arith.constant 0 : index
      %c0_55 = arith.constant 0 : index
      %123 = vector.load %arg6[%c0_54, %c0_55] : memref<32x4xi32, #tpu.memory_space<vmem>>, vector<32x4xi32>
      %c0_56 = arith.constant 0 : index
      %c0_57 = arith.constant 0 : index
      %124 = vector.load %arg4[%c0_56, %c0_57] : memref<32x4xi32, #tpu.memory_space<vmem>>, vector<32x4xi32>
      tpu.vector_store %arg4[%c0_56, %c0_57], %123 {strides = array<i32>} : memref<32x4xi32, #tpu.memory_space<vmem>>, vector<32x4xi32>,
    } else {
    }
    return
  }
  func.func @transform_0(%arg0: i32, %arg1: i32) -> (i32, i32) {
    %c0_i32 = arith.constant 0 : i32
    %c0_i32_0 = arith.constant 0 : i32
    return %arg0, %c0_i32 : i32, i32
  }
  func.func @transform_1(%arg0: i32, %arg1: i32) -> (i32, i32) {
    %c0_i32 = arith.constant 0 : i32
    %c0_i32_0 = arith.constant 0 : i32
    return %arg1, %c0_i32 : i32, i32
  }
  func.func @transform_2(%arg0: i32, %arg1: i32) -> (i32, i32) {
    %c0_i32 = arith.constant 0 : i32
    %c0_i32_0 = arith.constant 0 : i32
    return %arg0, %c0_i32 : i32, i32
  }
}

</mosaic_0001>

<bundles_post_ra>
// kernel: tpu_custom_call.1
= control target key start
LH: loop header
LB: loop body
LE: loop exit
PB: predicated region body
PF: predicated region fallthrough
CT: control target
= control target key end

     0   :  { %vm32_vm0 = vcmask 130048   ;;  %v86_v8 = vlaneseq  ;;  %vm114_vm2 = vcmask 261120   ;;  %s1448_s1 = inlined_call_operand.vmem [shape: f32[32,16], index: 1, kind: input, shape index: {}]   ;;  %s1449_s0 = inlined_call_operand.vmem [shape: f32[32,16], index: 0, kind: input, shape index: {}]   ;;  %s1450_s2 = inlined_call_operand.vmem [shape: s32[32,4], index: 2, kind: output, shape index: {}]  }
   0x1   :  { %v31_v0 = vld [vmem:[%s1448_s1 + $0x18] sm:$0xff]  ;;  %v30_v1 = vld [vmem:[%s1448_s1 + $0x10] sm:$0xff]  ;;  %v29_v2 = vld [vmem:[%s1448_s1 + $0x8] sm:$0xff] }
   0x2   :  { %922 = vmatpush.xpose.msk.msra.mxu0 %vm32_vm0, %v31_v0  ;;  %931 = vmatpush.xpose.msk.msra.mxu2 %vm32_vm0, %v31_v0  ;;  %v28_v3 = vld [vmem:[%s1448_s1] sm:$0xff]  ;;  %v26_v5 = vld [vmem:[%s1449_s0 + $0x10] sm:$0xff]  ;;  %v25_v6 = vld [vmem:[%s1449_s0 + $0x8] sm:$0xff]  ;;  %v1007_v9 = vand.u32 127, %v86_v8  ;;  %v92_v10 = vshrl.u32 %v86_v8, 7 }
   0x3   :  { %930 = vmatpush.xpose.msk.msra.mxu1 %vm32_vm0, %v31_v0  ;;  %932 = vmatpush.xpose.msk.msra.mxu3 %vm32_vm0, %v31_v0  ;;  %v24_v4 = vld [vmem:[%s1449_s0] sm:$0xff]  ;;  %v27_v7 = vld [vmem:[%s1449_s0 + $0x18] sm:$0xff]  ;;  %s945_s0 = smov 4  }
   0x4   :  { %vm102_vm1 = vcmp.eq.s32.totalorder %v92_v10, %v1007_v9  ;;  %v93_v14 = vadd.s32 8, %v92_v10  ;;  %v94_v15 = vadd.s32 16, %v92_v10  ;;  %v95_v20 = vadd.s32 24, %v92_v10 }
   0x6   :  { %923 = vmatpush.xpose.msk.msra.mxu0 %vm32_vm0, %v30_v1  ;;  %934 = vmatpush.xpose.msk.msra.mxu2 %vm32_vm0, %v30_v1  ;;  %vm103_vm3 = vcmp.eq.s32.totalorder %v93_v14, %v1007_v9  ;;  %vm104_vm4 = vcmp.eq.s32.totalorder %v94_v15, %v1007_v9  ;;  %vm105_vm5 = vcmp.eq.s32.totalorder %v95_v20, %v1007_v9 }
   0x7   :  { %933 = vmatpush.xpose.msk.msra.mxu1 %vm32_vm0, %v30_v1  ;;  %935 = vmatpush.xpose.msk.msra.mxu3 %vm32_vm0, %v30_v1 }
   0xa   :  { %924 = vmatpush.xpose.msk.msra.mxu0 %vm32_vm0, %v29_v2  ;;  %937 = vmatpush.xpose.msk.msra.mxu2 %vm32_vm0, %v29_v2 }
   0xb   :  { %936 = vmatpush.xpose.msk.msra.mxu1 %vm32_vm0, %v29_v2  ;;  %938 = vmatpush.xpose.msk.msra.mxu3 %vm32_vm0, %v29_v2 }
   0xe   :  { %925 = vmatpush.xpose.msk.msra.mxu0 %vm32_vm0, %v28_v3  ;;  %940 = vmatpush.xpose.msk.msra.mxu2 %vm32_vm0, %v28_v3 }
   0xf   :  { %939 = vmatpush.xpose.msk.msra.mxu1 %vm32_vm0, %v28_v3  ;;  %941 = vmatpush.xpose.msk.msra.mxu3 %vm32_vm0, %v28_v3 }
  0x11   :  { %926 = vmatmul.msk.f32.vlgmr.msra.gmra.mxu0 %vm32_vm0, %v24_v4  ;;  %928 = vmatmul.msk.f32.vlgmr.msra.gmra.mxu2 %vm32_vm0, %v26_v5 }
  0x12   :  { %927 = vmatmul.msk.f32.vlgmr.msra.gmra.mxu1 %vm32_vm0, %v25_v6  ;;  %929 = vmatmul.msk.f32.vlgmr.msra.gmra.mxu3 %vm32_vm0, %v27_v7 }
  0x8e   :  { %v74_v11 = vpop.f32.mrf.mxu0 }
  0x8f   :  { %v106_v12 = vadd.f32 10.0, %v74_v11  ;;  %v77_v13 = vpop.f32.mrf.mxu1 }
  0x90   :  { %v107_v18 = vadd.f32 10.0, %v77_v13 }
  0x91   :  { %v1010_v16 = vsel %vm102_vm1, %v106_v12, %v74_v11 }
  0x92   :  { %v115_v17 = vsel %vm114_vm2, %v1010_v16, -inf  ;;  %v1016_v23 = vsel %vm103_vm3, %v107_v18, %v77_v13 }
  0x93   :  { %116 = vmax.xlane.f32.xlu0 %v115_v17  ;;  %v118_v27 = vsel %vm114_vm2, %v1016_v23, -inf }
  0x94   :  { %v80_v19 = vpop.f32.mrf.mxu2 }
  0x95   :  { %v108_v21 = vadd.f32 10.0, %v80_v19  ;;  %v83_v22 = vpop.f32.mrf.mxu3 }
  0x96   :  { %v109_v25 = vadd.f32 10.0, %v83_v22 }
  0x97   :  { %v1018_v24 = vsel %vm104_vm4, %v108_v21, %v80_v19 }
  0x98   :  { %v121_v26 = vsel %vm114_vm2, %v1018_v24, -inf  ;;  %v1025_v28 = vsel %vm105_vm5, %v109_v25, %v83_v22 }
  0x99   :  { %122 = vmax.xlane.f32.xlu1 %v121_v26  ;;  %v124_v29 = vsel %vm114_vm2, %v1025_v28, -inf }
  0x9b   :  { %119 = vmax.xlane.f32.xlu0 %v118_v27 }
  0xa1   :  { %125 = vmax.xlane.f32.xlu1 %v124_v29 }
 0x106   :  { %v1029_v30 = vpop.xlane.xlu0 %116 }
 0x107   :  { %vm127_vm6 = vcmp.eq.f32.partialorder %v1010_v16, %v1029_v30 }
 0x108   :  { %v131_v31 = vsel %vm127_vm6, %v1007_v9, 2147483647 }
 0x109   :  { %v135_v32 = vsel %vm114_vm2, %v131_v31, 2147483647 }
 0x10a   :  { %v137_v33 = vshra.s32 %v135_v32, 16  ;;  %v136_v50 = vand.u32 65535, %v135_v32 }
 0x10c   :  { %v1035_v34 = vpop.xlane.xlu1 %122  ;;  %v139_v35 = vcvt.s32.f32 %v137_v33  ;;  %v138_v52 = vcvt.s32.f32 %v136_v50 }
 0x10d   :  { %vm129_vm7 = vcmp.eq.f32.partialorder %v1018_v24, %v1035_v34 }
 0x10e   :  { %v133_v36 = vsel %vm129_vm7, %v1007_v9, 2147483647  ;;  %140 = vmin.xlane.f32.xlu2 %v139_v35  ;;  %v1040_v37 = vpop.xlane.xlu0 %119 }
 0x10f   :  { %vm128_vm8 = vcmp.eq.f32.partialorder %v1016_v23, %v1040_v37  ;;  %v165_v38 = vsel %vm114_vm2, %v133_v36, 2147483647 }
 0x110   :  { %v132_v39 = vsel %vm128_vm8, %v1007_v9, 2147483647  ;;  %v167_v40 = vshra.s32 %v165_v38, 16  ;;  %v166_v54 = vand.u32 65535, %v165_v38 }
 0x111   :  { %v150_v41 = vsel %vm114_vm2, %v132_v39, 2147483647 }
 0x112   :  { %v169_v42 = vcvt.s32.f32 %v167_v40  ;;  %v152_v43 = vshra.s32 %v150_v41, 16  ;;  %v151_v55 = vand.u32 65535, %v150_v41  ;;  %v168_v57 = vcvt.s32.f32 %v166_v54 }
 0x114   :  { %v1047_v44 = vpop.xlane.xlu1 %125  ;;  %170 = vmin.xlane.f32.xlu0 %v169_v42  ;;  %v154_v45 = vcvt.s32.f32 %v152_v43  ;;  %v153_v60 = vcvt.s32.f32 %v151_v55 }
 0x115   :  { %vm130_vm9 = vcmp.eq.f32.partialorder %v1025_v28, %v1047_v44 }
 0x116   :  { %v134_v46 = vsel %vm130_vm9, %v1007_v9, 2147483647  ;;  %155 = vmin.xlane.f32.xlu2 %v154_v45 }
 0x117   :  { %v180_v47 = vsel %vm114_vm2, %v134_v46, 2147483647 }
 0x118   :  { %v182_v48 = vshra.s32 %v180_v47, 16  ;;  %v181_v62 = vand.u32 65535, %v180_v47 }
 0x11a   :  { %v184_v49 = vcvt.s32.f32 %v182_v48  ;;  %v183_v0 = vcvt.s32.f32 %v181_v62 }
 0x11c   :  { %185 = vmin.xlane.f32.xlu1 %v184_v49 }
 0x181   :  { %v141_v51 = vpop.xlane.xlu2 %140 }
 0x182   :  { %vm142_vm10 = vcmp.eq.f32.partialorder %v139_v35, %v141_v51  ;;  %v147_v2 = vcvt.f32.s32 %v141_v51 }
 0x183   :  { %v143_v53 = vsel %vm142_vm10, %v138_v52, inf }
 0x184   :  { %144 = vmin.xlane.f32.xlu2 %v143_v53  ;;  %v148_v4 = vshll.u32 %v147_v2, 16 }
 0x187   :  { %v171_v56 = vpop.xlane.xlu0 %170 }
 0x188   :  { %vm172_vm11 = vcmp.eq.f32.partialorder %v169_v42, %v171_v56  ;;  %v177_v6 = vcvt.f32.s32 %v171_v56 }
 0x189   :  { %v156_v58 = vpop.xlane.xlu2 %155  ;;  %v173_v59 = vsel %vm172_vm11, %v168_v57, inf }
 0x18a   :  { %174 = vmin.xlane.f32.xlu1 %v173_v59  ;;  %vm157_vm12 = vcmp.eq.f32.partialorder %v154_v45, %v156_v58  ;;  %v162_v8 = vcvt.f32.s32 %v156_v58  ;;  %v178_v12 = vshll.u32 %v177_v6, 16 }
 0x18b   :  { %v158_v61 = vsel %vm157_vm12, %v153_v60, inf }
 0x18c   :  { %159 = vmin.xlane.f32.xlu0 %v158_v61  ;;  %v163_v17 = vshll.u32 %v162_v8, 16 }
 0x18f   :  { %v186_v63 = vpop.xlane.xlu1 %185 }
 0x190   :  { %vm187_vm13 = vcmp.eq.f32.partialorder %v184_v49, %v186_v63  ;;  %v192_v20 = vcvt.f32.s32 %v186_v63 }
 0x191   :  { %v188_v1 = vsel %vm187_vm13, %v183_v0, inf }
 0x192   :  { %189 = vmin.xlane.f32.xlu2 %v188_v1  ;;  %v193_v27 = vshll.u32 %v192_v20, 16 }
 0x1f7   :  { %v145_v3 = vpop.xlane.xlu2 %144 }
 0x1f8   :  { %v146_v5 = vcvt.f32.s32 %v145_v3 }
 0x1fa   :  { %v1053_v7 = vadd.s32 %v148_v4, %v146_v5 }
 0x1fc   :  { %vm195_vm14 = vcmp.eq.s32.totalorder %v1007_v9, %v1053_v7 }
 0x1fd   :  { %v175_v10 = vpop.xlane.xlu1 %174  ;;  %v1058_v11 = vsel %vm195_vm14, -inf, %v1010_v16 }
 0x1fe   :  { %v176_v13 = vcvt.f32.s32 %v175_v10  ;;  %v203_v14 = vsel %vm114_vm2, %v1058_v11, -inf }
 0x1ff   :  { %204 = vmax.xlane.f32.xlu0 %v203_v14  ;;  %v160_v15 = vpop.xlane.xlu0 %159 }
 0x200   :  { %v1062_v18 = vadd.s32 %v178_v12, %v176_v13  ;;  %v161_v19 = vcvt.f32.s32 %v160_v15 }
 0x202   :  { %v1064_v21 = vadd.s32 %v163_v17, %v161_v19  ;;  %vm197_vm15 = vcmp.eq.s32.totalorder %v1007_v9, %v1062_v18 }
 0x203   :  { %v1069_v16 = vsel %vm197_vm15, -inf, %v1018_v24  ;;  %vm459_vm15 = vcmask 7168  }
 0x204   :  { %v209_v22 = vsel %vm114_vm2, %v1069_v16, -inf  ;;  %vm196_vm0 = vcmp.eq.s32.totalorder %v1007_v9, %v1064_v21 }
 0x205   :  { %v190_v25 = vpop.xlane.xlu2 %189  ;;  %210 = vmax.xlane.f32.xlu2 %v209_v22  ;;  %v1076_v26 = vsel %vm196_vm0, -inf, %v1016_v23  ;;  %vm464_vm0 = vcmask 15360  }
 0x206   :  { %v191_v29 = vcvt.f32.s32 %v190_v25  ;;  %v206_v31 = vsel %vm114_vm2, %v1076_v26, -inf }
 0x207   :  { %207 = vmax.xlane.f32.xlu1 %v206_v31 }
 0x208   :  { %v1080_v32 = vadd.s32 %v193_v27, %v191_v29 }
 0x20a   :  { %vm198_vm1 = vcmp.eq.s32.totalorder %v1007_v9, %v1080_v32 }
 0x20b   :  { %v1085_v24 = vsel %vm198_vm1, -inf, %v1025_v28 }
 0x20c   :  { %v212_v33 = vsel %vm114_vm2, %v1085_v24, -inf }
 0x20d   :  { %213 = vmax.xlane.f32.xlu0 %v212_v33 }
 0x272   :  { %v1089_v23 = vpop.xlane.xlu0 %204 }
 0x273   :  { %vm215_vm3 = vcmp.eq.f32.partialorder %v1058_v11, %v1089_v23 }
 0x274   :  { %v219_v35 = vsel %vm215_vm3, %v1007_v9, 2147483647 }
 0x275   :  { %v223_v36 = vsel %vm114_vm2, %v219_v35, 2147483647 }
 0x276   :  { %v225_v38 = vshra.s32 %v223_v36, 16  ;;  %v224_v55 = vand.u32 65535, %v223_v36 }
 0x278   :  { %v1095_v39 = vpop.xlane.xlu2 %210  ;;  %v227_v40 = vcvt.s32.f32 %v225_v38  ;;  %v226_v57 = vcvt.s32.f32 %v224_v55 }
 0x279   :  { %vm217_vm4 = vcmp.eq.f32.partialorder %v1069_v16, %v1095_v39 }
 0x27a   :  { %v221_v28 = vsel %vm217_vm4, %v1007_v9, 2147483647  ;;  %v1100_v41 = vpop.xlane.xlu1 %207  ;;  %228 = vmin.xlane.f32.xlu1 %v227_v40 }
 0x27b   :  { %vm216_vm5 = vcmp.eq.f32.partialorder %v1076_v26, %v1100_v41  ;;  %v253_v42 = vsel %vm114_vm2, %v221_v28, 2147483647 }
 0x27c   :  { %v220_v43 = vsel %vm216_vm5, %v1007_v9, 2147483647  ;;  %v255_v45 = vshra.s32 %v253_v42, 16  ;;  %v254_v59 = vand.u32 65535, %v253_v42 }
 0x27d   :  { %v238_v46 = vsel %vm114_vm2, %v220_v43, 2147483647 }
 0x27e   :  { %v257_v47 = vcvt.s32.f32 %v255_v45  ;;  %v240_v48 = vshra.s32 %v238_v46, 16  ;;  %v239_v60 = vand.u32 65535, %v238_v46  ;;  %v256_v62 = vcvt.s32.f32 %v254_v59 }
 0x280   :  { %258 = vmin.xlane.f32.xlu0 %v257_v47  ;;  %v1107_v49 = vpop.xlane.xlu0 %213  ;;  %v242_v50 = vcvt.s32.f32 %v240_v48  ;;  %v241_v1 = vcvt.s32.f32 %v239_v60 }
 0x281   :  { %vm218_vm6 = vcmp.eq.f32.partialorder %v1085_v24, %v1107_v49 }
 0x282   :  { %v222_v51 = vsel %vm218_vm6, %v1007_v9, 2147483647  ;;  %243 = vmin.xlane.f32.xlu2 %v242_v50 }
 0x283   :  { %v268_v52 = vsel %vm114_vm2, %v222_v51, 2147483647 }
 0x284   :  { %v270_v53 = vshra.s32 %v268_v52, 16  ;;  %v269_v3 = vand.u32 65535, %v268_v52 }
 0x286   :  { %v272_v54 = vcvt.s32.f32 %v270_v53  ;;  %v271_v5 = vcvt.s32.f32 %v269_v3 }
 0x288   :  { %273 = vmin.xlane.f32.xlu1 %v272_v54 }
 0x2ed   :  { %v229_v56 = vpop.xlane.xlu1 %228 }
 0x2ee   :  { %vm230_vm7 = vcmp.eq.f32.partialorder %v227_v40, %v229_v56  ;;  %v235_v8 = vcvt.f32.s32 %v229_v56 }
 0x2ef   :  { %v231_v58 = vsel %vm230_vm7, %v226_v57, inf }
 0x2f0   :  { %232 = vmin.xlane.f32.xlu2 %v231_v58  ;;  %v236_v12 = vshll.u32 %v235_v8, 16 }
 0x2f3   :  { %v259_v61 = vpop.xlane.xlu0 %258 }
 0x2f4   :  { %vm260_vm8 = vcmp.eq.f32.partialorder %v257_v47, %v259_v61  ;;  %v265_v14 = vcvt.f32.s32 %v259_v61 }
 0x2f5   :  { %v244_v63 = vpop.xlane.xlu2 %243  ;;  %v261_v0 = vsel %vm260_vm8, %v256_v62, inf }
 0x2f6   :  { %262 = vmin.xlane.f32.xlu1 %v261_v0  ;;  %vm245_vm9 = vcmp.eq.f32.partialorder %v242_v50, %v244_v63  ;;  %v250_v17 = vcvt.f32.s32 %v244_v63  ;;  %v266_v22 = vshll.u32 %v265_v14, 16 }
 0x2f7   :  { %v246_v2 = vsel %vm245_vm9, %v241_v1, inf }
 0x2f8   :  { %247 = vmin.xlane.f32.xlu0 %v246_v2  ;;  %v251_v31 = vshll.u32 %v250_v17, 16 }
 0x2fb   :  { %v274_v4 = vpop.xlane.xlu1 %273 }
 0x2fc   :  { %vm275_vm10 = vcmp.eq.f32.partialorder %v272_v54, %v274_v4  ;;  %v280_v36 = vcvt.f32.s32 %v274_v4 }
 0x2fd   :  { %v276_v6 = vsel %vm275_vm10, %v271_v5, inf }
 0x2fe   :  { %277 = vmin.xlane.f32.xlu2 %v276_v6  ;;  %v281_v43 = vshll.u32 %v280_v36, 16 }
 0x363   :  { %v233_v10 = vpop.xlane.xlu2 %232 }
 0x364   :  { %v234_v13 = vcvt.f32.s32 %v233_v10 }
 0x366   :  { %v1113_v15 = vadd.s32 %v236_v12, %v234_v13 }
 0x368   :  { %vm283_vm11 = vcmp.eq.s32.totalorder %v1007_v9, %v1113_v15 }
 0x369   :  { %v263_v19 = vpop.xlane.xlu1 %262  ;;  %v1118_v20 = vsel %vm283_vm11, -inf, %v1058_v11 }
 0x36a   :  { %v264_v25 = vcvt.f32.s32 %v263_v19  ;;  %v291_v27 = vsel %vm114_vm2, %v1118_v20, -inf }
 0x36b   :  { %292 = vmax.xlane.f32.xlu0 %v291_v27  ;;  %v248_v29 = vpop.xlane.xlu0 %247 }
 0x36c   :  { %v1122_v33 = vadd.s32 %v266_v22, %v264_v25  ;;  %v249_v35 = vcvt.f32.s32 %v248_v29 }
 0x36e   :  { %v1124_v38 = vadd.s32 %v251_v31, %v249_v35  ;;  %vm285_vm12 = vcmp.eq.s32.totalorder %v1007_v9, %v1122_v33 }
 0x36f   :  { %v1129_v11 = vsel %vm285_vm12, -inf, %v1069_v16 }
 0x370   :  { %v297_v40 = vsel %vm114_vm2, %v1129_v11, -inf  ;;  %vm284_vm13 = vcmp.eq.s32.totalorder %v1007_v9, %v1124_v38 }
 0x371   :  { %v278_v28 = vpop.xlane.xlu2 %277  ;;  %298 = vmax.xlane.f32.xlu2 %v297_v40  ;;  %v1136_v42 = vsel %vm284_vm13, -inf, %v1076_v26  ;;  %v460_v26 = vsel %vm459_vm15, %v1029_v30, %v1089_v23 }
 0x372   :  { %v279_v45 = vcvt.f32.s32 %v278_v28  ;;  %v294_v46 = vsel %vm114_vm2, %v1136_v42, -inf }
 0x373   :  { %295 = vmax.xlane.f32.xlu1 %v294_v46 }
 0x374   :  { %v1140_v47 = vadd.s32 %v281_v43, %v279_v45 }
 0x376   :  { %vm286_vm14 = vcmp.eq.s32.totalorder %v1007_v9, %v1140_v47 }
 0x377   :  { %v1145_v16 = vsel %vm286_vm14, -inf, %v1085_v24  ;;  %vm469_vm14 = vcmask 23552  }
 0x378   :  { %v300_v48 = vsel %vm114_vm2, %v1145_v16, -inf }
 0x379   :  { %301 = vmax.xlane.f32.xlu0 %v300_v48  ;;  %v474_v48 = vsel %vm459_vm15, %v1053_v7, %v1113_v15  ;;  %v476_v7 = vsel %vm459_vm15, %v1062_v18, %v1122_v33 }
 0x3de   :  { %v293_v50 = vpop.xlane.xlu0 %292 }
 0x3df   :  { %vm303_vm1 = vcmp.eq.f32.partialorder %v1118_v20, %v293_v50  ;;  %v1154_v51 = vsel %vm464_vm0, %v460_v26, %v293_v50 }
 0x3e0   :  { %v307_v52 = vsel %vm303_vm1, %v1007_v9, 2147483647 }
 0x3e1   :  { %v311_v24 = vsel %vm114_vm2, %v307_v52, 2147483647 }
 0x3e2   :  { %v313_v53 = vshra.s32 %v311_v24, 16  ;;  %v312_v4 = vand.u32 65535, %v311_v24 }
 0x3e4   :  { %v1158_v54 = vpop.xlane.xlu2 %298  ;;  %v315_v55 = vcvt.s32.f32 %v313_v53  ;;  %v314_v6 = vcvt.s32.f32 %v312_v4 }
 0x3e5   :  { %vm305_vm3 = vcmp.eq.f32.partialorder %v1129_v11, %v1158_v54 }
 0x3e6   :  { %v309_v56 = vsel %vm305_vm3, %v1007_v9, 2147483647  ;;  %v1163_v30 = vpop.xlane.xlu1 %295  ;;  %316 = vmin.xlane.f32.xlu1 %v315_v55 }
 0x3e7   :  { %vm304_vm4 = vcmp.eq.f32.partialorder %v1136_v42, %v1163_v30  ;;  %v341_v23 = vsel %vm114_vm2, %v309_v56, 2147483647 }
 0x3e8   :  { %v308_v57 = vsel %vm304_vm4, %v1007_v9, 2147483647  ;;  %v343_v58 = vshra.s32 %v341_v23, 16  ;;  %v342_v10 = vand.u32 65535, %v341_v23 }
 0x3e9   :  { %v326_v59 = vsel %vm114_vm2, %v308_v57, 2147483647 }
 0x3ea   :  { %v345_v60 = vcvt.s32.f32 %v343_v58  ;;  %v328_v61 = vshra.s32 %v326_v59, 16  ;;  %v327_v12 = vand.u32 65535, %v326_v59  ;;  %v344_v14 = vcvt.s32.f32 %v342_v10 }
 0x3ec   :  { %346 = vmin.xlane.f32.xlu0 %v345_v60  ;;  %v1170_v62 = vpop.xlane.xlu0 %301  ;;  %v330_v63 = vcvt.s32.f32 %v328_v61  ;;  %v329_v22 = vcvt.s32.f32 %v327_v12 }
 0x3ed   :  { %vm306_vm5 = vcmp.eq.f32.partialorder %v1145_v16, %v1170_v62 }
 0x3ee   :  { %v310_v0 = vsel %vm306_vm5, %v1007_v9, 2147483647  ;;  %331 = vmin.xlane.f32.xlu2 %v330_v63 }
 0x3ef   :  { %v356_v1 = vsel %vm114_vm2, %v310_v0, 2147483647 }
 0x3f0   :  { %v358_v2 = vshra.s32 %v356_v1, 16  ;;  %v357_v27 = vand.u32 65535, %v356_v1 }
 0x3f2   :  { %v360_v3 = vcvt.s32.f32 %v358_v2  ;;  %v359_v31 = vcvt.s32.f32 %v357_v27 }
 0x3f4   :  { %361 = vmin.xlane.f32.xlu1 %v360_v3 }
 0x459   :  { %v317_v5 = vpop.xlane.xlu1 %316 }
 0x45a   :  { %vm318_vm6 = vcmp.eq.f32.partialorder %v315_v55, %v317_v5  ;;  %v323_v36 = vcvt.f32.s32 %v317_v5 }
 0x45b   :  { %v319_v8 = vsel %vm318_vm6, %v314_v6, inf  ;;  %vm15_vm6 = vcmask 31744  }
 0x45c   :  { %320 = vmin.xlane.f32.xlu2 %v319_v8  ;;  %v324_v28 = vshll.u32 %v323_v36, 16  ;;  %v946_v36 = vmov -inf  }
 0x45d   :  { %16 = vst.msk [vmem:[#allocation2] sm:$0xff] %vm15_vm6, %v946_v36 }
 0x45e   :  { %17 = vst.msk [vmem:[#allocation2 + $0x8] sm:$0xff] %vm15_vm6, %v946_v36 }
 0x45f   :  { %v347_v13 = vpop.xlane.xlu0 %346  ;;  %18 = vst.msk [vmem:[#allocation2 + $0x10] sm:$0xff] %vm15_vm6, %v946_v36 }
 0x460   :  { %vm348_vm7 = vcmp.eq.f32.partialorder %v345_v60, %v347_v13  ;;  %v353_v45 = vcvt.f32.s32 %v347_v13  ;;  %19 = vst.msk [vmem:[#allocation2 + $0x18] sm:$0xff] %vm15_vm6, %v946_v36 }
 0x461   :  { %v332_v17 = vpop.xlane.xlu2 %331  ;;  %v349_v19 = vsel %vm348_vm7, %v344_v14, inf }
 0x462   :  { %350 = vmin.xlane.f32.xlu1 %v349_v19  ;;  %vm333_vm8 = vcmp.eq.f32.partialorder %v330_v63, %v332_v17  ;;  %v338_v26 = vcvt.f32.s32 %v332_v17  ;;  %v354_v53 = vshll.u32 %v353_v45, 16  ;;  %v475_v63 = vsel %vm459_vm15, %v1064_v21, %v1124_v38 }
 0x463   :  { %v334_v25 = vsel %vm333_vm8, %v329_v22, inf  ;;  %v477_v21 = vsel %vm459_vm15, %v1080_v32, %v1140_v47 }
 0x464   :  { %335 = vmin.xlane.f32.xlu0 %v334_v25  ;;  %v339_v57 = vshll.u32 %v338_v26, 16 }
 0x467   :  { %v362_v29 = vpop.xlane.xlu1 %361 }
 0x468   :  { %vm363_vm9 = vcmp.eq.f32.partialorder %v360_v3, %v362_v29  ;;  %v368_v15 = vcvt.f32.s32 %v362_v29 }
 0x469   :  { %v364_v35 = vsel %vm363_vm9, %v359_v31, inf }
 0x46a   :  { %365 = vmin.xlane.f32.xlu2 %v364_v35  ;;  %v369_v2 = vshll.u32 %v368_v15, 16 }
 0x4cf   :  { %v321_v40 = vpop.xlane.xlu2 %320 }
 0x4d0   :  { %v322_v43 = vcvt.f32.s32 %v321_v40 }
 0x4d2   :  { %v325_v46 = vadd.s32 %v324_v28, %v322_v43  ;;  %v462_v28 = vsel %vm459_vm15, %v1035_v34, %v1095_v39  ;;  %v463_v34 = vsel %vm459_vm15, %v1047_v44, %v1107_v49 }
 0x4d3   :  { %v467_v43 = vsel %vm464_vm0, %v462_v28, %v1158_v54  ;;  %v468_v39 = vsel %vm464_vm0, %v463_v34, %v1170_v62 }
 0x4d4   :  { %vm371_vm10 = vcmp.eq.s32.totalorder %v1007_v9, %v325_v46  ;;  %v1181_v50 = vsel %vm464_vm0, %v474_v48, %v325_v46  ;;  %v461_v48 = vsel %vm459_vm15, %v1040_v37, %v1100_v41  ;;  %v486_v37 = vld [vmem:[#allocation2] sm:$0xff] }
 0x4d5   :  { %v351_v52 = vpop.xlane.xlu1 %350  ;;  %v375_v24 = vsel %vm371_vm10, -inf, %v1118_v20  ;;  %v466_v26 = vsel %vm464_vm0, %v461_v48, %v1163_v30 }
 0x4d6   :  { %v352_v55 = vcvt.f32.s32 %v351_v52  ;;  %v379_v56 = vsel %vm114_vm2, %v375_v24, -inf }
 0x4d7   :  { %380 = vmax.xlane.f32.xlu0 %v379_v56  ;;  %v336_v23 = vpop.xlane.xlu0 %335 }
 0x4d8   :  { %v355_v58 = vadd.s32 %v354_v53, %v352_v55  ;;  %v337_v59 = vcvt.f32.s32 %v336_v23 }
 0x4da   :  { %v340_v60 = vadd.s32 %v339_v57, %v337_v59  ;;  %vm373_vm11 = vcmp.eq.s32.totalorder %v1007_v9, %v355_v58  ;;  %v1190_v61 = vsel %vm464_vm0, %v476_v7, %v355_v58  ;;  %v488_v7 = vld [vmem:[#allocation2 + $0x10] sm:$0xff] }
 0x4db   :  { %v377_v20 = vsel %vm373_vm11, -inf, %v1129_v11 }
 0x4dc   :  { %v385_v0 = vsel %vm114_vm2, %v377_v20, -inf  ;;  %vm372_vm12 = vcmp.eq.s32.totalorder %v1007_v9, %v340_v60  ;;  %v1199_v1 = vsel %vm464_vm0, %v475_v63, %v340_v60 }
 0x4dd   :  { %v366_v18 = vpop.xlane.xlu2 %365  ;;  %386 = vmax.xlane.f32.xlu2 %v385_v0  ;;  %v376_v33 = vsel %vm372_vm12, -inf, %v1136_v42 }
 0x4de   :  { %v367_v3 = vcvt.f32.s32 %v366_v18  ;;  %v382_v4 = vsel %vm114_vm2, %v376_v33, -inf }
 0x4df   :  { %383 = vmax.xlane.f32.xlu1 %v382_v4  ;;  %v487_v4 = vld [vmem:[#allocation2 + $0x8] sm:$0xff] }
 0x4e0   :  { %v370_v11 = vadd.s32 %v369_v2, %v367_v3 }
 0x4e2   :  { %vm374_vm13 = vcmp.eq.s32.totalorder %v1007_v9, %v370_v11  ;;  %v1208_v38 = vsel %vm464_vm0, %v477_v21, %v370_v11 }
 0x4e3   :  { %v378_v5 = vsel %vm374_vm13, -inf, %v1145_v16 }
 0x4e4   :  { %v388_v6 = vsel %vm114_vm2, %v378_v5, -inf }
 0x4e5   :  { %389 = vmax.xlane.f32.xlu0 %v388_v6  ;;  %v489_v6 = vld [vmem:[#allocation2 + $0x18] sm:$0xff] }
 0x54a   :  { %v381_v42 = vpop.xlane.xlu0 %380 }
 0x54b   :  { %vm391_vm1 = vcmp.eq.f32.partialorder %v375_v24, %v381_v42  ;;  %v470_v8 = vsel %vm469_vm14, %v1154_v51, %v381_v42 }
 0x54c   :  { %v395_v10 = vsel %vm391_vm1, %v1007_v9, 2147483647  ;;  %494 = vrot.lane.b32.xlu0 %v470_v8, %s945_s0 }
 0x54d   :  { %v399_v32 = vsel %vm114_vm2, %v395_v10, 2147483647 }
 0x54e   :  { %v401_v47 = vshra.s32 %v399_v32, 16  ;;  %v400_v53 = vand.u32 65535, %v399_v32 }
 0x550   :  { %v403_v12 = vcvt.s32.f32 %v401_v47  ;;  %v387_v31 = vpop.xlane.xlu2 %386  ;;  %v402_v44 = vcvt.s32.f32 %v400_v53 }
 0x551   :  { %vm393_vm5 = vcmp.eq.f32.partialorder %v377_v20, %v387_v31  ;;  %v472_v45 = vsel %vm469_vm14, %v467_v43, %v387_v31 }
 0x552   :  { %v384_v13 = vpop.xlane.xlu1 %383  ;;  %404 = vmin.xlane.f32.xlu1 %v403_v12  ;;  %v397_v35 = vsel %vm393_vm5, %v1007_v9, 2147483647 }
 0x553   :  { %vm392_vm3 = vcmp.eq.f32.partialorder %v376_v33, %v384_v13  ;;  %v429_v40 = vsel %vm114_vm2, %v397_v35, 2147483647  ;;  %v471_v52 = vsel %vm469_vm14, %v466_v26, %v384_v13 }
 0x554   :  { %v396_v16 = vsel %vm392_vm3, %v1007_v9, 2147483647  ;;  %v430_v18 = vand.u32 65535, %v429_v40 }
 0x555   :  { %v414_v14 = vsel %vm114_vm2, %v396_v16, 2147483647 }
 0x556   :  { %v416_v17 = vshra.s32 %v414_v14, 16  ;;  %v415_v62 = vand.u32 65535, %v414_v14  ;;  %v432_v2 = vcvt.s32.f32 %v430_v18 }
 0x558   :  { %v390_v19 = vpop.xlane.xlu0 %389  ;;  %v418_v22 = vcvt.s32.f32 %v416_v17  ;;  %v417_v23 = vcvt.s32.f32 %v415_v62 }
 0x559   :  { %vm394_vm4 = vcmp.eq.f32.partialorder %v378_v5, %v390_v19  ;;  %v473_v54 = vsel %vm469_vm14, %v468_v39, %v390_v19 }
 0x55a   :  { %v398_v51 = vsel %vm394_vm4, %v1007_v9, 2147483647  ;;  %419 = vmin.xlane.f32.xlu2 %v418_v22  ;;  %v431_v9 = vshra.s32 %v429_v40, 16 }
 0x55b   :  { %v444_v25 = vsel %vm114_vm2, %v398_v51, 2147483647  ;;  %vm527_vm2 = vcmask 64512  }
 0x55c   :  { %v446_v27 = vshra.s32 %v444_v25, 16  ;;  %v433_v46 = vcvt.s32.f32 %v431_v9  ;;  %v445_v58 = vand.u32 65535, %v444_v25  ;;  %v947_v9 = vmov 4294967295  }
 0x55d   :  { %20 = vst.msk [vmem:[#allocation3] sm:$0xff] %vm15_vm6, %v947_v9 }
 0x55e   :  { %v448_v29 = vcvt.s32.f32 %v446_v27  ;;  %v447_v15 = vcvt.s32.f32 %v445_v58  ;;  %21 = vst.msk [vmem:[#allocation3 + $0x8] sm:$0xff] %vm15_vm6, %v947_v9 }
 0x55f   :  { %22 = vst.msk [vmem:[#allocation3 + $0x10] sm:$0xff] %vm15_vm6, %v947_v9 }
 0x560   :  { %449 = vmin.xlane.f32.xlu1 %v448_v29  ;;  %23 = vst.msk [vmem:[#allocation3 + $0x18] sm:$0xff] %vm15_vm6, %v947_v9 }
 0x564   :  { %v511_v39 = vld [vmem:[#allocation3] sm:$0xff] }
 0x565   :  { %v512_v53 = vld [vmem:[#allocation3 + $0x8] sm:$0xff] }
 0x566   :  { %v513_v62 = vld [vmem:[#allocation3 + $0x10] sm:$0xff] }
 0x572   :  { %498 = vrot.lane.b32.xlu2 %v472_v45, %s945_s0 }
 0x576   :  { %434 = vmin.xlane.f32.xlu0 %v433_v46 }
 0x579   :  { %496 = vrot.lane.b32.xlu1 %v471_v52, %s945_s0 }
 0x58a   :  { %500 = vrot.lane.b32.xlu0 %v473_v54, %s945_s0 }
 0x5be   :  { %v495_v41 = vpop.permute.xlu0 %494 }
 0x5bf   :  { %v1249_v30 = vsel %vm15_vm6, %v486_v37, %v495_v41 }
 0x5c0   :  { %v528_v24 = vsel %vm527_vm2, %v1249_v30, -inf }
 0x5c1   :  { %529 = vmax.xlane.f32.xlu2 %v528_v24 }
 0x5c5   :  { %v405_v55 = vpop.xlane.xlu1 %404 }
 0x5c6   :  { %vm406_vm7 = vcmp.eq.f32.partialorder %v403_v12, %v405_v55  ;;  %v411_v47 = vcvt.f32.s32 %v405_v55 }
 0x5c7   :  { %v407_v49 = vsel %vm406_vm7, %v402_v44, inf }
 0x5c8   :  { %v412_v13 = vshll.u32 %v411_v47, 16 }
 0x5c9   :  { %408 = vmin.xlane.f32.xlu2 %v407_v49 }
 0x5cd   :  { %v420_v56 = vpop.xlane.xlu2 %419 }
 0x5ce   :  { %vm421_vm0 = vcmp.eq.f32.partialorder %v418_v22, %v420_v56  ;;  %v426_v17 = vcvt.f32.s32 %v420_v56 }
 0x5cf   :  { %v422_v57 = vsel %vm421_vm0, %v417_v23, inf }
 0x5d0   :  { %423 = vmin.xlane.f32.xlu0 %v422_v57  ;;  %v427_v51 = vshll.u32 %v426_v17, 16 }
 0x5d3   :  { %v450_v59 = vpop.xlane.xlu1 %449 }
 0x5d4   :  { %vm451_vm8 = vcmp.eq.f32.partialorder %v448_v29, %v450_v59  ;;  %v456_v27 = vcvt.f32.s32 %v450_v59 }
 0x5d5   :  { %v499_v60 = vpop.permute.xlu2 %498  ;;  %v452_v20 = vsel %vm451_vm8, %v447_v15, inf  ;;  %v514_v15 = vld [vmem:[#allocation3 + $0x18] sm:$0xff] }
 0x5d6   :  { %v1254_v63 = vsel %vm15_vm6, %v488_v7, %v499_v60  ;;  %453 = vmin.xlane.f32.xlu2 %v452_v20  ;;  %v457_v36 = vshll.u32 %v456_v27, 16 }
 0x5d7   :  { %v534_v0 = vsel %vm527_vm2, %v1254_v63, -inf }
 0x5d8   :  { %535 = vmax.xlane.f32.xlu0 %v534_v0 }
 0x5e9   :  { %v435_v33 = vpop.xlane.xlu0 %434 }
 0x5ea   :  { %vm436_vm9 = vcmp.eq.f32.partialorder %v433_v46, %v435_v33 }
 0x5eb   :  { %v437_v3 = vsel %vm436_vm9, %v432_v2, inf  ;;  %v497_v11 = vpop.permute.xlu1 %496  ;;  %vm704_vm9 = vcmask 15368  }
 0x5ec   :  { %438 = vmin.xlane.f32.xlu1 %v437_v3  ;;  %v1259_v21 = vsel %vm15_vm6, %v487_v4, %v497_v11 }
 0x5ed   :  { %v531_v5 = vsel %vm527_vm2, %v1259_v21, -inf }
 0x5f4   :  { %532 = vmax.xlane.f32.xlu1 %v531_v5 }
 0x5fc   :  { %v501_v42 = vpop.permute.xlu0 %500 }
 0x5fd   :  { %v1264_v8 = vsel %vm15_vm6, %v489_v6, %v501_v42 }
 0x5fe   :  { %v537_v10 = vsel %vm527_vm2, %v1264_v8, -inf }
 0x5ff   :  { %538 = vmax.xlane.f32.xlu2 %v537_v10 }
 0x634   :  { %v530_v32 = vpop.xlane.xlu2 %529 }
 0x635   :  { %608 = vst.msk [vmem:[#allocation2] sm:$0xff] %vm459_vm15, %v530_v32  ;;  %vm540_vm10 = vcmp.eq.f32.partialorder %v1249_v30, %v530_v32 }
 0x63c   :  { %v409_v12 = vpop.xlane.xlu2 %408 }
 0x63d   :  { %v410_v16 = vcvt.f32.s32 %v409_v12 }
 0x63f   :  { %v413_v14 = vadd.s32 %v412_v13, %v410_v16 }
 0x641   :  { %v482_v19 = vsel %vm469_vm14, %v1181_v50, %v413_v14 }
 0x642   :  { %515 = vrot.lane.b32.xlu1 %v482_v19, %s945_s0 }
 0x643   :  { %v424_v22 = vpop.xlane.xlu0 %423 }
 0x644   :  { %v425_v25 = vcvt.f32.s32 %v424_v22 }
 0x646   :  { %v428_v29 = vadd.s32 %v427_v51, %v425_v25 }
 0x648   :  { %v483_v31 = vsel %vm469_vm14, %v1199_v1, %v428_v29  ;;  %v441_v1 = vcvt.f32.s32 %v435_v33 }
 0x649   :  { %v454_v35 = vpop.xlane.xlu2 %453  ;;  %517 = vrot.lane.b32.xlu0 %v483_v31, %s945_s0 }
 0x64a   :  { %v455_v40 = vcvt.f32.s32 %v454_v35  ;;  %v442_v46 = vshll.u32 %v441_v1, 16 }
 0x64b   :  { %v536_v28 = vpop.xlane.xlu0 %535 }
 0x64c   :  { %v458_v43 = vadd.s32 %v457_v36, %v455_v40  ;;  %610 = vst.msk [vmem:[#allocation2 + $0x10] sm:$0xff] %vm459_vm15, %v536_v28  ;;  %vm542_vm12 = vcmp.eq.f32.partialorder %v1254_v63, %v536_v28 }
 0x64e   :  { %v485_v50 = vsel %vm469_vm14, %v1208_v38, %v458_v43 }
 0x651   :  { %521 = vrot.lane.b32.xlu0 %v485_v50, %s945_s0 }
 0x65f   :  { %v439_v45 = vpop.xlane.xlu1 %438 }
 0x660   :  { %v440_v48 = vcvt.f32.s32 %v439_v45 }
 0x662   :  { %v443_v26 = vadd.s32 %v442_v46, %v440_v48 }
 0x664   :  { %v484_v52 = vsel %vm469_vm14, %v1190_v61, %v443_v26 }
 0x665   :  { %519 = vrot.lane.b32.xlu2 %v484_v52, %s945_s0 }
 0x667   :  { %v533_v38 = vpop.xlane.xlu1 %532 }
 0x668   :  { %609 = vst.msk [vmem:[#allocation2 + $0x8] sm:$0xff] %vm459_vm15, %v533_v38  ;;  %vm541_vm11 = vcmp.eq.f32.partialorder %v1259_v21, %v533_v38 }
 0x672   :  { %v539_v34 = vpop.xlane.xlu2 %538 }
 0x673   :  { %611 = vst.msk [vmem:[#allocation2 + $0x18] sm:$0xff] %vm459_vm15, %v539_v34  ;;  %vm543_vm13 = vcmp.eq.f32.partialorder %v1264_v8, %v539_v34 }
 0x6b4   :  { %v516_v54 = vpop.permute.xlu1 %515 }
 0x6b5   :  { %v1290_v37 = vsel %vm15_vm6, %v511_v39, %v516_v54 }
 0x6b6   :  { %v544_v41 = vsel %vm540_vm10, %v1290_v37, 2147483647 }
 0x6b7   :  { %v548_v24 = vsel %vm527_vm2, %v544_v41, 2147483647 }
 0x6b8   :  { %v550_v61 = vshra.s32 %v548_v24, 16  ;;  %v549_v6 = vand.u32 65535, %v548_v24 }
 0x6ba   :  { %v552_v55 = vcvt.s32.f32 %v550_v61  ;;  %v551_v10 = vcvt.s32.f32 %v549_v6 }
 0x6bb   :  { %v518_v44 = vpop.permute.xlu0 %517 }
 0x6bc   :  { %v1296_v49 = vsel %vm15_vm6, %v512_v53, %v518_v44  ;;  %553 = vmin.xlane.f32.xlu1 %v552_v55 }
 0x6bd   :  { %v545_v56 = vsel %vm541_vm11, %v1296_v49, 2147483647 }
 0x6be   :  { %v563_v23 = vsel %vm527_vm2, %v545_v56, 2147483647 }
 0x6bf   :  { %v520_v57 = vpop.permute.xlu2 %519  ;;  %v565_v58 = vshra.s32 %v563_v23, 16  ;;  %v564_v47 = vand.u32 65535, %v563_v23 }
 0x6c0   :  { %v1302_v59 = vsel %vm15_vm6, %v513_v62, %v520_v57 }
 0x6c1   :  { %v567_v7 = vcvt.s32.f32 %v565_v58  ;;  %v546_v60 = vsel %vm542_vm12, %v1302_v59, 2147483647  ;;  %v566_v13 = vcvt.s32.f32 %v564_v47 }
 0x6c2   :  { %v578_v20 = vsel %vm527_vm2, %v546_v60, 2147483647 }
 0x6c3   :  { %568 = vmin.xlane.f32.xlu2 %v567_v7  ;;  %v522_v0 = vpop.permute.xlu0 %521  ;;  %v580_v18 = vshra.s32 %v578_v20, 16  ;;  %v579_v16 = vand.u32 65535, %v578_v20 }
 0x6c4   :  { %v1308_v33 = vsel %vm15_vm6, %v514_v15, %v522_v0 }
 0x6c5   :  { %v582_v2 = vcvt.s32.f32 %v580_v18  ;;  %v547_v3 = vsel %vm543_vm13, %v1308_v33, 2147483647  ;;  %v581_v19 = vcvt.s32.f32 %v579_v16 }
 0x6c6   :  { %v593_v4 = vsel %vm527_vm2, %v547_v3, 2147483647 }
 0x6c7   :  { %583 = vmin.xlane.f32.xlu0 %v582_v2  ;;  %v595_v11 = vshra.s32 %v593_v4, 16  ;;  %v594_v22 = vand.u32 65535, %v593_v4 }
 0x6c9   :  { %v597_v5 = vcvt.s32.f32 %v595_v11  ;;  %v596_v27 = vcvt.s32.f32 %v594_v22 }
 0x6cb   :  { %598 = vmin.xlane.f32.xlu1 %v597_v5 }
 0x72f   :  { %v554_v42 = vpop.xlane.xlu1 %553 }
 0x730   :  { %vm555_vm14 = vcmp.eq.f32.partialorder %v552_v55, %v554_v42  ;;  %v560_v31 = vcvt.f32.s32 %v554_v42 }
 0x731   :  { %v556_v32 = vsel %vm555_vm14, %v551_v10, inf }
 0x732   :  { %557 = vmin.xlane.f32.xlu2 %v556_v32  ;;  %v561_v36 = vshll.u32 %v560_v31, 16 }
 0x736   :  { %v569_v12 = vpop.xlane.xlu2 %568 }
 0x737   :  { %vm570_vm1 = vcmp.eq.f32.partialorder %v567_v7, %v569_v12  ;;  %v575_v43 = vcvt.f32.s32 %v569_v12 }
 0x738   :  { %v571_v14 = vsel %vm570_vm1, %v566_v13, inf }
 0x739   :  { %572 = vmin.xlane.f32.xlu0 %v571_v14  ;;  %v576_v45 = vshll.u32 %v575_v43, 16 }
 0x73a   :  { %v584_v17 = vpop.xlane.xlu0 %583 }
 0x73b   :  { %vm585_vm3 = vcmp.eq.f32.partialorder %v582_v2, %v584_v17  ;;  %v590_v46 = vcvt.f32.s32 %v584_v17 }
 0x73c   :  { %v586_v51 = vsel %vm585_vm3, %v581_v19, inf }
 0x73d   :  { %587 = vmin.xlane.f32.xlu1 %v586_v51  ;;  %v591_v38 = vshll.u32 %v590_v46, 16 }
 0x73e   :  { %v599_v25 = vpop.xlane.xlu1 %598 }
 0x73f   :  { %vm600_vm4 = vcmp.eq.f32.partialorder %v597_v5, %v599_v25  ;;  %v605_v34 = vcvt.f32.s32 %v599_v25 }
 0x740   :  { %v601_v29 = vsel %vm600_vm4, %v596_v27, inf }
 0x741   :  { %602 = vmin.xlane.f32.xlu2 %v601_v29  ;;  %v606_v61 = vshll.u32 %v605_v34, 16 }
 0x7a5   :  { %v558_v35 = vpop.xlane.xlu2 %557 }
 0x7a6   :  { %v559_v40 = vcvt.f32.s32 %v558_v35 }
 0x7a8   :  { %v562_v28 = vadd.s32 %v561_v36, %v559_v40 }
 0x7aa   :  { %612 = vst.msk [vmem:[#allocation3] sm:$0xff] %vm459_vm15, %v562_v28  ;;  %vm616_vm5 = vcmp.eq.s32.totalorder %v1290_v37, %v562_v28 }
 0x7ab   :  { %v1315_v50 = vsel %vm616_vm5, -inf, %v1249_v30 }
 0x7ac   :  { %v573_v9 = vpop.xlane.xlu0 %572  ;;  %v624_v1 = vsel %vm527_vm2, %v1315_v50, -inf }
 0x7ad   :  { %v574_v48 = vcvt.f32.s32 %v573_v9  ;;  %625 = vmax.xlane.f32.xlu0 %v624_v1 }
 0x7af   :  { %v577_v26 = vadd.s32 %v576_v45, %v574_v48 }
 0x7b0   :  { %v588_v52 = vpop.xlane.xlu1 %587 }
 0x7b1   :  { %613 = vst.msk [vmem:[#allocation3 + $0x8] sm:$0xff] %vm459_vm15, %v577_v26  ;;  %v589_v39 = vcvt.f32.s32 %v588_v52  ;;  %vm617_vm7 = vcmp.eq.s32.totalorder %v1296_v49, %v577_v26 }
 0x7b2   :  { %v1322_v30 = vsel %vm617_vm7, -inf, %v1259_v21 }
 0x7b3   :  { %v592_v54 = vadd.s32 %v591_v38, %v589_v39  ;;  %v627_v41 = vsel %vm527_vm2, %v1322_v30, -inf }
 0x7b4   :  { %v603_v24 = vpop.xlane.xlu2 %602  ;;  %628 = vmax.xlane.f32.xlu1 %v627_v41 }
 0x7b5   :  { %614 = vst.msk [vmem:[#allocation3 + $0x10] sm:$0xff] %vm459_vm15, %v592_v54  ;;  %v604_v53 = vcvt.f32.s32 %v603_v24  ;;  %vm618_vm0 = vcmp.eq.s32.totalorder %v1302_v59, %v592_v54 }
 0x7b6   :  { %v1329_v55 = vsel %vm618_vm0, -inf, %v1254_v63 }
 0x7b7   :  { %v607_v44 = vadd.s32 %v606_v61, %v604_v53  ;;  %v630_v21 = vsel %vm527_vm2, %v1329_v55, -inf }
 0x7b8   :  { %631 = vmax.xlane.f32.xlu2 %v630_v21 }
 0x7b9   :  { %615 = vst.msk [vmem:[#allocation3 + $0x18] sm:$0xff] %vm459_vm15, %v607_v44  ;;  %vm619_vm8 = vcmp.eq.s32.totalorder %v1308_v33, %v607_v44 }
 0x7ba   :  { %v1336_v62 = vsel %vm619_vm8, -inf, %v1264_v8  ;;  %vm801_vm8 = vcmask 23568  }
 0x7bb   :  { %v633_v56 = vsel %vm527_vm2, %v1336_v62, -inf }
 0x7bc   :  { %634 = vmax.xlane.f32.xlu0 %v633_v56 }
 0x820   :  { %v626_v23 = vpop.xlane.xlu0 %625 }
 0x821   :  { %vm636_vm10 = vcmp.eq.f32.partialorder %v1315_v50, %v626_v23  ;;  %705 = vst.msk [vmem:[#allocation2] sm:$0xff] %vm704_vm9, %v626_v23 }
 0x822   :  { %v640_v63 = vsel %vm636_vm10, %v1290_v37, 2147483647 }
 0x823   :  { %v644_v57 = vsel %vm527_vm2, %v640_v63, 2147483647 }
 0x824   :  { %v646_v58 = vshra.s32 %v644_v57, 16  ;;  %v645_v47 = vand.u32 65535, %v644_v57 }
 0x826   :  { %v648_v7 = vcvt.s32.f32 %v646_v58  ;;  %v647_v13 = vcvt.s32.f32 %v645_v47 }
 0x827   :  { %v629_v15 = vpop.xlane.xlu1 %628 }
 0x828   :  { %vm637_vm15 = vcmp.eq.f32.partialorder %v1322_v30, %v629_v15  ;;  %706 = vst.msk [vmem:[#allocation2 + $0x8] sm:$0xff] %vm704_vm9, %v629_v15  ;;  %649 = vmin.xlane.f32.xlu1 %v648_v7 }
 0x829   :  { %v641_v8 = vsel %vm637_vm15, %v1296_v49, 2147483647 }
 0x82a   :  { %v659_v60 = vsel %vm527_vm2, %v641_v8, 2147483647 }
 0x82b   :  { %v632_v20 = vpop.xlane.xlu2 %631  ;;  %v661_v0 = vshra.s32 %v659_v60, 16  ;;  %v660_v14 = vand.u32 65535, %v659_v60 }
 0x82c   :  { %vm638_vm11 = vcmp.eq.f32.partialorder %v1329_v55, %v632_v20  ;;  %707 = vst.msk [vmem:[#allocation2 + $0x10] sm:$0xff] %vm704_vm9, %v632_v20 }
 0x82d   :  { %v642_v18 = vsel %vm638_vm11, %v1302_v59, 2147483647  ;;  %v663_v2 = vcvt.s32.f32 %v661_v0  ;;  %v662_v19 = vcvt.s32.f32 %v660_v14 }
 0x82e   :  { %v674_v3 = vsel %vm527_vm2, %v642_v18, 2147483647 }
 0x82f   :  { %664 = vmin.xlane.f32.xlu2 %v663_v2  ;;  %v635_v4 = vpop.xlane.xlu0 %634  ;;  %v676_v11 = vshra.s32 %v674_v3, 16  ;;  %v675_v22 = vand.u32 65535, %v674_v3 }
 0x830   :  { %vm639_vm12 = vcmp.eq.f32.partialorder %v1336_v62, %v635_v4  ;;  %708 = vst.msk [vmem:[#allocation2 + $0x18] sm:$0xff] %vm704_vm9, %v635_v4 }
 0x831   :  { %v643_v5 = vsel %vm639_vm12, %v1308_v33, 2147483647  ;;  %v678_v6 = vcvt.s32.f32 %v676_v11  ;;  %v677_v27 = vcvt.s32.f32 %v675_v22 }
 0x832   :  { %v689_v42 = vsel %vm527_vm2, %v643_v5, 2147483647 }
 0x833   :  { %679 = vmin.xlane.f32.xlu0 %v678_v6  ;;  %v691_v10 = vshra.s32 %v689_v42, 16  ;;  %v690_v29 = vand.u32 65535, %v689_v42 }
 0x835   :  { %v693_v32 = vcvt.s32.f32 %v691_v10  ;;  %v692_v36 = vcvt.s32.f32 %v690_v29 }
 0x837   :  { %694 = vmin.xlane.f32.xlu1 %v693_v32 }
 0x89b   :  { %v650_v12 = vpop.xlane.xlu1 %649 }
 0x89c   :  { %vm651_vm13 = vcmp.eq.f32.partialorder %v648_v7, %v650_v12  ;;  %v656_v28 = vcvt.f32.s32 %v650_v12 }
 0x89d   :  { %v652_v16 = vsel %vm651_vm13, %v647_v13, inf }
 0x89e   :  { %653 = vmin.xlane.f32.xlu2 %v652_v16  ;;  %v657_v9 = vshll.u32 %v656_v28, 16 }
 0x8a2   :  { %v665_v17 = vpop.xlane.xlu2 %664 }
 0x8a3   :  { %vm666_vm14 = vcmp.eq.f32.partialorder %v663_v2, %v665_v17  ;;  %v671_v46 = vcvt.f32.s32 %v665_v17 }
 0x8a4   :  { %v667_v51 = vsel %vm666_vm14, %v662_v19, inf }
 0x8a5   :  { %668 = vmin.xlane.f32.xlu0 %v667_v51  ;;  %v672_v38 = vshll.u32 %v671_v46, 16 }
 0x8a6   :  { %v680_v25 = vpop.xlane.xlu0 %679 }
 0x8a7   :  { %vm681_vm1 = vcmp.eq.f32.partialorder %v678_v6, %v680_v25  ;;  %v686_v34 = vcvt.f32.s32 %v680_v25 }
 0x8a8   :  { %v682_v31 = vsel %vm681_vm1, %v677_v27, inf }
 0x8a9   :  { %683 = vmin.xlane.f32.xlu1 %v682_v31  ;;  %v687_v24 = vshll.u32 %v686_v34, 16 }
 0x8aa   :  { %v695_v35 = vpop.xlane.xlu1 %694 }
 0x8ab   :  { %vm696_vm3 = vcmp.eq.f32.partialorder %v693_v32, %v695_v35  ;;  %v701_v61 = vcvt.f32.s32 %v695_v35 }
 0x8ac   :  { %v697_v40 = vsel %vm696_vm3, %v692_v36, inf }
 0x8ad   :  { %698 = vmin.xlane.f32.xlu2 %v697_v40  ;;  %v702_v23 = vshll.u32 %v701_v61, 16 }
 0x911   :  { %v654_v43 = vpop.xlane.xlu2 %653 }
 0x912   :  { %v655_v1 = vcvt.f32.s32 %v654_v43 }
 0x914   :  { %v658_v45 = vadd.s32 %v657_v9, %v655_v1 }
 0x916   :  { %709 = vst.msk [vmem:[#allocation3] sm:$0xff] %vm704_vm9, %v658_v45  ;;  %vm713_vm4 = vcmp.eq.s32.totalorder %v1290_v37, %v658_v45 }
 0x917   :  { %v1359_v48 = vsel %vm713_vm4, -inf, %v1315_v50 }
 0x918   :  { %v669_v26 = vpop.xlane.xlu0 %668  ;;  %v721_v52 = vsel %vm527_vm2, %v1359_v48, -inf }
 0x919   :  { %v670_v39 = vcvt.f32.s32 %v669_v26  ;;  %722 = vmax.xlane.f32.xlu0 %v721_v52 }
 0x91b   :  { %v673_v54 = vadd.s32 %v672_v38, %v670_v39 }
 0x91c   :  { %v684_v41 = vpop.xlane.xlu1 %683 }
 0x91d   :  { %710 = vst.msk [vmem:[#allocation3 + $0x8] sm:$0xff] %vm704_vm9, %v673_v54  ;;  %v685_v53 = vcvt.f32.s32 %v684_v41  ;;  %vm714_vm5 = vcmp.eq.s32.totalorder %v1296_v49, %v673_v54 }
 0x91e   :  { %v1366_v50 = vsel %vm714_vm5, -inf, %v1322_v30 }
 0x91f   :  { %v688_v44 = vadd.s32 %v687_v24, %v685_v53  ;;  %v724_v21 = vsel %vm527_vm2, %v1366_v50, -inf }
 0x920   :  { %v699_v56 = vpop.xlane.xlu2 %698  ;;  %725 = vmax.xlane.f32.xlu1 %v724_v21 }
 0x921   :  { %711 = vst.msk [vmem:[#allocation3 + $0x10] sm:$0xff] %vm704_vm9, %v688_v44  ;;  %v700_v63 = vcvt.f32.s32 %v699_v56  ;;  %vm715_vm7 = vcmp.eq.s32.totalorder %v1302_v59, %v688_v44 }
 0x922   :  { %v1373_v57 = vsel %vm715_vm7, -inf, %v1329_v55 }
 0x923   :  { %v703_v58 = vadd.s32 %v702_v23, %v700_v63  ;;  %v727_v30 = vsel %vm527_vm2, %v1373_v57, -inf }
 0x924   :  { %728 = vmax.xlane.f32.xlu2 %v727_v30 }
 0x925   :  { %712 = vst.msk [vmem:[#allocation3 + $0x18] sm:$0xff] %vm704_vm9, %v703_v58  ;;  %vm716_vm0 = vcmp.eq.s32.totalorder %v1308_v33, %v703_v58 }
 0x926   :  { %v1380_v7 = vsel %vm716_vm0, -inf, %v1336_v62  ;;  %vm898_vm0 = vcmask 31768  }
 0x927   :  { %v730_v15 = vsel %vm527_vm2, %v1380_v7, -inf }
 0x928   :  { %731 = vmax.xlane.f32.xlu0 %v730_v15 }
 0x98c   :  { %v723_v8 = vpop.xlane.xlu0 %722 }
 0x98d   :  { %vm733_vm10 = vcmp.eq.f32.partialorder %v1359_v48, %v723_v8  ;;  %802 = vst.msk [vmem:[#allocation2] sm:$0xff] %vm801_vm8, %v723_v8 }
 0x98e   :  { %v737_v55 = vsel %vm733_vm10, %v1290_v37, 2147483647 }
 0x98f   :  { %v741_v60 = vsel %vm527_vm2, %v737_v55, 2147483647 }
 0x990   :  { %v743_v20 = vshra.s32 %v741_v60, 16  ;;  %v742_v14 = vand.u32 65535, %v741_v60 }
 0x992   :  { %v745_v0 = vcvt.s32.f32 %v743_v20  ;;  %v744_v19 = vcvt.s32.f32 %v742_v14 }
 0x993   :  { %v726_v18 = vpop.xlane.xlu1 %725 }
 0x994   :  { %vm734_vm9 = vcmp.eq.f32.partialorder %v1366_v50, %v726_v18  ;;  %803 = vst.msk [vmem:[#allocation2 + $0x8] sm:$0xff] %vm801_vm8, %v726_v18  ;;  %746 = vmin.xlane.f32.xlu1 %v745_v0 }
 0x995   :  { %v738_v62 = vsel %vm734_vm9, %v1296_v49, 2147483647 }
 0x996   :  { %v756_v2 = vsel %vm527_vm2, %v738_v62, 2147483647 }
 0x997   :  { %v729_v3 = vpop.xlane.xlu2 %728  ;;  %v758_v4 = vshra.s32 %v756_v2, 16  ;;  %v757_v51 = vand.u32 65535, %v756_v2 }
 0x998   :  { %vm735_vm15 = vcmp.eq.f32.partialorder %v1373_v57, %v729_v3  ;;  %804 = vst.msk [vmem:[#allocation2 + $0x10] sm:$0xff] %vm801_vm8, %v729_v3 }
 0x999   :  { %v739_v11 = vsel %vm735_vm15, %v1302_v59, 2147483647  ;;  %v760_v5 = vcvt.s32.f32 %v758_v4  ;;  %v759_v27 = vcvt.s32.f32 %v757_v51 }
 0x99a   :  { %v771_v6 = vsel %vm527_vm2, %v739_v11, 2147483647 }
 0x99b   :  { %761 = vmin.xlane.f32.xlu2 %v760_v5  ;;  %v732_v42 = vpop.xlane.xlu0 %731  ;;  %v773_v10 = vshra.s32 %v771_v6, 16  ;;  %v772_v29 = vand.u32 65535, %v771_v6 }
 0x99c   :  { %vm736_vm11 = vcmp.eq.f32.partialorder %v1380_v7, %v732_v42  ;;  %805 = vst.msk [vmem:[#allocation2 + $0x18] sm:$0xff] %vm801_vm8, %v732_v42 }
 0x99d   :  { %v740_v32 = vsel %vm736_vm11, %v1308_v33, 2147483647  ;;  %v775_v47 = vcvt.s32.f32 %v773_v10  ;;  %v774_v36 = vcvt.s32.f32 %v772_v29 }
 0x99e   :  { %v786_v12 = vsel %vm527_vm2, %v740_v32, 2147483647 }
 0x99f   :  { %776 = vmin.xlane.f32.xlu0 %v775_v47  ;;  %v788_v13 = vshra.s32 %v786_v12, 16  ;;  %v787_v40 = vand.u32 65535, %v786_v12 }
 0x9a1   :  { %v790_v16 = vcvt.s32.f32 %v788_v13  ;;  %v789_v9 = vcvt.s32.f32 %v787_v40 }
 0x9a3   :  { %791 = vmin.xlane.f32.xlu1 %v790_v16 }
 0xa07   :  { %v747_v17 = vpop.xlane.xlu1 %746 }
 0xa08   :  { %vm748_vm12 = vcmp.eq.f32.partialorder %v745_v0, %v747_v17  ;;  %v753_v45 = vcvt.f32.s32 %v747_v17 }
 0xa09   :  { %v749_v22 = vsel %vm748_vm12, %v744_v19, inf }
 0xa0a   :  { %750 = vmin.xlane.f32.xlu2 %v749_v22  ;;  %v754_v26 = vshll.u32 %v753_v45, 16 }
 0xa0e   :  { %v762_v25 = vpop.xlane.xlu2 %761 }
 0xa0f   :  { %vm763_vm13 = vcmp.eq.f32.partialorder %v760_v5, %v762_v25  ;;  %v768_v34 = vcvt.f32.s32 %v762_v25 }
 0xa10   :  { %v764_v31 = vsel %vm763_vm13, %v759_v27, inf }
 0xa11   :  { %765 = vmin.xlane.f32.xlu0 %v764_v31  ;;  %v769_v24 = vshll.u32 %v768_v34, 16 }
 0xa12   :  { %v777_v35 = vpop.xlane.xlu0 %776 }
 0xa13   :  { %vm778_vm14 = vcmp.eq.f32.partialorder %v775_v47, %v777_v35  ;;  %v783_v61 = vcvt.f32.s32 %v777_v35 }
 0xa14   :  { %v779_v28 = vsel %vm778_vm14, %v774_v36, inf }
 0xa15   :  { %780 = vmin.xlane.f32.xlu1 %v779_v28  ;;  %v784_v56 = vshll.u32 %v783_v61, 16 }
 0xa16   :  { %v792_v43 = vpop.xlane.xlu1 %791 }
 0xa17   :  { %vm793_vm1 = vcmp.eq.f32.partialorder %v790_v16, %v792_v43  ;;  %v798_v23 = vcvt.f32.s32 %v792_v43 }
 0xa18   :  { %v794_v1 = vsel %vm793_vm1, %v789_v9, inf }
 0xa19   :  { %795 = vmin.xlane.f32.xlu2 %v794_v1  ;;  %v799_v8 = vshll.u32 %v798_v23, 16 }
 0xa7d   :  { %v751_v46 = vpop.xlane.xlu2 %750 }
 0xa7e   :  { %v752_v52 = vcvt.f32.s32 %v751_v46 }
 0xa80   :  { %v755_v38 = vadd.s32 %v754_v26, %v752_v52 }
 0xa82   :  { %806 = vst.msk [vmem:[#allocation3] sm:$0xff] %vm801_vm8, %v755_v38  ;;  %vm810_vm3 = vcmp.eq.s32.totalorder %v1290_v37, %v755_v38 }
 0xa83   :  { %v814_v39 = vsel %vm810_vm3, -inf, %v1359_v48 }
 0xa84   :  { %v766_v54 = vpop.xlane.xlu0 %765  ;;  %v818_v41 = vsel %vm527_vm2, %v814_v39, -inf }
 0xa85   :  { %v767_v53 = vcvt.f32.s32 %v766_v54  ;;  %819 = vmax.xlane.f32.xlu0 %v818_v41 }
 0xa87   :  { %v770_v44 = vadd.s32 %v769_v24, %v767_v53 }
 0xa88   :  { %v781_v21 = vpop.xlane.xlu1 %780 }
 0xa89   :  { %807 = vst.msk [vmem:[#allocation3 + $0x8] sm:$0xff] %vm801_vm8, %v770_v44  ;;  %v782_v63 = vcvt.f32.s32 %v781_v21  ;;  %vm811_vm4 = vcmp.eq.s32.totalorder %v1296_v49, %v770_v44 }
 0xa8a   :  { %v815_v58 = vsel %vm811_vm4, -inf, %v1366_v50 }
 0xa8b   :  { %v785_v30 = vadd.s32 %v784_v56, %v782_v63  ;;  %v821_v48 = vsel %vm527_vm2, %v815_v58, -inf }
 0xa8c   :  { %v796_v15 = vpop.xlane.xlu2 %795  ;;  %822 = vmax.xlane.f32.xlu1 %v821_v48 }
 0xa8d   :  { %808 = vst.msk [vmem:[#allocation3 + $0x10] sm:$0xff] %vm801_vm8, %v785_v30  ;;  %v797_v55 = vcvt.f32.s32 %v796_v15  ;;  %vm812_vm5 = vcmp.eq.s32.totalorder %v1302_v59, %v785_v30 }
 0xa8e   :  { %v816_v60 = vsel %vm812_vm5, -inf, %v1373_v57 }
 0xa8f   :  { %v800_v20 = vadd.s32 %v799_v8, %v797_v55  ;;  %v824_v0 = vsel %vm527_vm2, %v816_v60, -inf }
 0xa90   :  { %825 = vmax.xlane.f32.xlu2 %v824_v0 }
 0xa91   :  { %809 = vst.msk [vmem:[#allocation3 + $0x18] sm:$0xff] %vm801_vm8, %v800_v20  ;;  %vm813_vm7 = vcmp.eq.s32.totalorder %v1308_v33, %v800_v20 }
 0xa92   :  { %v817_v50 = vsel %vm813_vm7, -inf, %v1380_v7 }
 0xa93   :  { %v827_v18 = vsel %vm527_vm2, %v817_v50, -inf }
 0xa94   :  { %828 = vmax.xlane.f32.xlu0 %v827_v18 }
 0xaf8   :  { %v820_v62 = vpop.xlane.xlu0 %819 }
 0xaf9   :  { %vm830_vm10 = vcmp.eq.f32.partialorder %v814_v39, %v820_v62  ;;  %899 = vst.msk [vmem:[#allocation2] sm:$0xff] %vm898_vm0, %v820_v62 }
 0xafa   :  { %v834_v57 = vsel %vm830_vm10, %v1290_v37, 2147483647 }
 0xafb   :  { %v838_v2 = vsel %vm527_vm2, %v834_v57, 2147483647 }
 0xafc   :  { %v840_v3 = vshra.s32 %v838_v2, 16  ;;  %v839_v19 = vand.u32 65535, %v838_v2 }
 0xafe   :  { %v842_v4 = vcvt.s32.f32 %v840_v3  ;;  %v841_v22 = vcvt.s32.f32 %v839_v19 }
 0xaff   :  { %v823_v11 = vpop.xlane.xlu1 %822 }
 0xb00   :  { %vm831_vm8 = vcmp.eq.f32.partialorder %v815_v58, %v823_v11  ;;  %900 = vst.msk [vmem:[#allocation2 + $0x8] sm:$0xff] %vm898_vm0, %v823_v11  ;;  %843 = vmin.xlane.f32.xlu1 %v842_v4 }
 0xb01   :  { %v835_v7 = vsel %vm831_vm8, %v1296_v49, 2147483647 }
 0xb02   :  { %v853_v5 = vsel %vm527_vm2, %v835_v7, 2147483647 }
 0xb03   :  { %v826_v6 = vpop.xlane.xlu2 %825  ;;  %v855_v42 = vshra.s32 %v853_v5, 16  ;;  %v854_v25 = vand.u32 65535, %v853_v5 }
 0xb04   :  { %vm832_vm9 = vcmp.eq.f32.partialorder %v816_v60, %v826_v6  ;;  %901 = vst.msk [vmem:[#allocation2 + $0x10] sm:$0xff] %vm898_vm0, %v826_v6 }
 0xb05   :  { %v836_v37 = vsel %vm832_vm9, %v1302_v59, 2147483647  ;;  %v857_v10 = vcvt.s32.f32 %v855_v42  ;;  %v856_v29 = vcvt.s32.f32 %v854_v25 }
 0xb06   :  { %v868_v32 = vsel %vm527_vm2, %v836_v37, 2147483647 }
 0xb07   :  { %858 = vmin.xlane.f32.xlu2 %v857_v10  ;;  %v829_v47 = vpop.xlane.xlu0 %828  ;;  %v870_v12 = vshra.s32 %v868_v32, 16  ;;  %v869_v31 = vand.u32 65535, %v868_v32 }
 0xb08   :  { %vm833_vm15 = vcmp.eq.f32.partialorder %v817_v50, %v829_v47  ;;  %902 = vst.msk [vmem:[#allocation2 + $0x18] sm:$0xff] %vm898_vm0, %v829_v47 }
 0xb09   :  { %v837_v49 = vsel %vm833_vm15, %v1308_v33, 2147483647  ;;  %v872_v13 = vcvt.s32.f32 %v870_v12  ;;  %v871_v36 = vcvt.s32.f32 %v869_v31 }
 0xb0a   :  { %v883_v16 = vsel %vm527_vm2, %v837_v49, 2147483647 }
 0xb0b   :  { %873 = vmin.xlane.f32.xlu0 %v872_v13  ;;  %v885_v14 = vshra.s32 %v883_v16, 16  ;;  %v884_v40 = vand.u32 65535, %v883_v16 }
 0xb0d   :  { %v887_v17 = vcvt.s32.f32 %v885_v14  ;;  %v886_v9 = vcvt.s32.f32 %v884_v40 }
 0xb0f   :  { %888 = vmin.xlane.f32.xlu1 %v887_v17 }
 0xb73   :  { %v844_v59 = vpop.xlane.xlu1 %843 }
 0xb74   :  { %vm845_vm11 = vcmp.eq.f32.partialorder %v842_v4, %v844_v59  ;;  %v850_v45 = vcvt.f32.s32 %v844_v59 }
 0xb75   :  { %v846_v51 = vsel %vm845_vm11, %v841_v22, inf }
 0xb76   :  { %847 = vmin.xlane.f32.xlu2 %v846_v51  ;;  %v851_v26 = vshll.u32 %v850_v45, 16 }
 0xb7a   :  { %v859_v27 = vpop.xlane.xlu2 %858 }
 0xb7b   :  { %vm860_vm12 = vcmp.eq.f32.partialorder %v857_v10, %v859_v27  ;;  %v865_v34 = vcvt.f32.s32 %v859_v27 }
 0xb7c   :  { %v861_v35 = vsel %vm860_vm12, %v856_v29, inf }
 0xb7d   :  { %862 = vmin.xlane.f32.xlu0 %v861_v35  ;;  %v866_v54 = vshll.u32 %v865_v34, 16 }
 0xb7e   :  { %v874_v33 = vpop.xlane.xlu0 %873 }
 0xb7f   :  { %vm875_vm2 = vcmp.eq.f32.partialorder %v872_v13, %v874_v33  ;;  %v880_v41 = vcvt.f32.s32 %v874_v33 }
 0xb80   :  { %v876_v28 = vsel %vm875_vm2, %v871_v36, inf }
 0xb81   :  { %877 = vmin.xlane.f32.xlu1 %v876_v28  ;;  %v881_v44 = vshll.u32 %v880_v41, 16 }
 0xb82   :  { %v889_v43 = vpop.xlane.xlu1 %888 }
 0xb83   :  { %vm890_vm13 = vcmp.eq.f32.partialorder %v887_v17, %v889_v43  ;;  %v895_v21 = vcvt.f32.s32 %v889_v43 }
 0xb84   :  { %v891_v1 = vsel %vm890_vm13, %v886_v9, inf }
 0xb85   :  { %892 = vmin.xlane.f32.xlu2 %v891_v1  ;;  %v896_v30 = vshll.u32 %v895_v21, 16 }
 0xbe9   :  { %v848_v46 = vpop.xlane.xlu2 %847 }
 0xbea   :  { %v849_v52 = vcvt.f32.s32 %v848_v46 }
 0xbec   :  { %v852_v38 = vadd.s32 %v851_v26, %v849_v52 }
 0xbee   :  { %903 = vst.msk [vmem:[#allocation3] sm:$0xff] %vm898_vm0, %v852_v38 }
 0xbf0   :  { %v863_v39 = vpop.xlane.xlu0 %862 }
 0xbf1   :  { %v864_v24 = vcvt.f32.s32 %v863_v39 }
 0xbf3   :  { %v867_v61 = vadd.s32 %v866_v54, %v864_v24 }
 0xbf4   :  { %v878_v53 = vpop.xlane.xlu1 %877 }
 0xbf5   :  { %v910_v56 = vld [vmem:[#allocation3] sm:$0xff]  ;;  %904 = vst.msk [vmem:[#allocation3 + $0x8] sm:$0xff] %vm898_vm0, %v867_v61  ;;  %v879_v23 = vcvt.f32.s32 %v878_v53 }
 0xbf6   :  { %914 = vst.msk [vmem:[%s1450_s2] sm:$0xff] %vm15_vm6, %v910_v56 }
 0xbf7   :  { %v882_v63 = vadd.s32 %v881_v44, %v879_v23 }
 0xbf8   :  { %v893_v58 = vpop.xlane.xlu2 %892 }
 0xbf9   :  { %905 = vst.msk [vmem:[#allocation3 + $0x10] sm:$0xff] %vm898_vm0, %v882_v63  ;;  %v894_v48 = vcvt.f32.s32 %v893_v58 }
 0xbfb   :  { %v897_v15 = vadd.s32 %v896_v30, %v894_v48 }
 0xbfc   :  { %v911_v8 = vld [vmem:[#allocation3 + $0x8] sm:$0xff] }
 0xbfd   :  { %915 = vst.msk [vmem:[%s1450_s2 + $0x8] sm:$0xff] %vm15_vm6, %v911_v8 }
 0xbfe   :  { %906 = vst.msk [vmem:[#allocation3 + $0x18] sm:$0xff] %vm898_vm0, %v897_v15 }
 0xc00   :  { %v912_v55 = vld [vmem:[#allocation3 + $0x10] sm:$0xff] }
 0xc01   :  { %916 = vst.msk [vmem:[%s1450_s2 + $0x10] sm:$0xff] %vm15_vm6, %v912_v55 }
 0xc05   :  { %v913_v60 = vld [vmem:[#allocation3 + $0x18] sm:$0xff] }
 0xc06   :  { %917 = vst.msk [vmem:[%s1450_s2 + $0x18] sm:$0xff] %vm15_vm6, %v913_v60 }

</bundles_post_ra>
